<compile_context>
chip_gen: v7x
topology: tpu7x:2x2x1
jax: 0.10.0
libtpu: 0.0.40
codegen_flags: <defaults>
</compile_context>

<pallas_src>
import functools

import jax
import jax.numpy as jnp
from jax.experimental import pallas as pl
from jax.experimental.pallas import tpu as pltpu


# ----------------------------- Pallas kernel ------------------------------ #

def _funcmol_kernel(y_ref, w_in_ref, w_blk_ref, gb_ref, w_out_ref, g_ref,
                    o_ref, h_ref, *, eps, inv_gs, act_dtype, w_blk_resident):
    """One residual block per grid step; h carried in VMEM scratch.

    y_ref     : (tb, D)        f32   input-code tile (same tile across block axis)
    w_in_ref  : (D, H)         bf16  input projection (resident)
    w_blk_ref : (nb, H, H)|(H, H) bf16  block weights (resident) or this block (streamed)
    gb_ref    : (nb, 2, H)|(2, H) f32   [gamma; beta] (resident or per-block)
    w_out_ref : (H, D)         bf16  output projection (resident)
    g_ref     : (H, H)         bf16  0/1 group-membership matrix
    o_ref     : (tb, D)              output tile (written on the last block)
    h_ref     : (tb, H)        f32   VMEM scratch accumulator (carried across blocks)
    """
    blk = pl.program_id(1)

    # ---- input projection (first block of this batch tile only) ----
    @pl.when(blk == 0)
    def _():
        h_ref[...] = jnp.dot(y_ref[...].astype(jnp.bfloat16), w_in_ref[...],
                             preferred_element_type=jnp.float32)

    h = h_ref[...]                                        # (tb, H) f32

    if w_blk_resident:
        w_b = w_blk_ref[blk]                              # (H, H) bf16
        gb = gb_ref[blk]                                  # (2, H) f32
    else:
        w_b = w_blk_ref[...]
        gb = gb_ref[...]
    gamma = gb[0, :][None, :]
    beta = gb[1, :][None, :]

    # ---- GroupNorm(h): two-pass centered stats on the bf16 MXU path ----
    g = g_ref[...]                                        # (H, H) bf16 0/1
    mean = jnp.dot(h.astype(jnp.bfloat16), g,
                   preferred_element_type=jnp.float32) * inv_gs
    c = h - mean                                          # centered, f32
    var = jnp.dot((c * c).astype(jnp.bfloat16), g,
                  preferred_element_type=jnp.float32) * inv_gs
    xn = c * jax.lax.rsqrt(var + eps)
    xn = xn * gamma + beta

    # ---- SiLU + Linear + residual (dropout == identity at inference) ----
    # TODO(synk): train-mode dropout is not implemented; forward is inference-mode.
    xn_a = xn.astype(act_dtype)                           # bf16 on v6e/v7x, f32 on v5
    act = xn_a * jax.nn.sigmoid(xn_a)
    h = h + jnp.dot(act.astype(jnp.bfloat16), w_b,
                    preferred_element_type=jnp.float32)
    h_ref[...] = h

    # ---- output projection (last block only) ----
    @pl.when(blk == pl.num_programs(1) - 1)
    def _():
        o_ref[...] = jnp.dot(h.astype(jnp.bfloat16), w_out_ref[...],
                             preferred_element_type=jnp.float32).astype(o_ref.dtype)


# ------------------------------ JAX wrapper -------------------------------- #

def _elementwise_dtype():
    """bf16 elementwise/EUP path on v6e/v7x; f32 on v5 and older (no bf16 VPU/EUP)."""
    try:
        kind = jax.devices()[0].device_kind.lower()
    except Exception:
        return jnp.float32
    if any(v in kind for v in ("v2", "v3", "v4", "v5")):
        return jnp.float32
    return jnp.bfloat16


def _vmem_bytes(tb, D, H, nb, resident):
    bf, f = 2, 4
    total = (2 * tb * D * f            # y tile (double-buffered)
             + 2 * tb * D * f          # output tile
             + 2 * D * H * bf          # w_in
             + 2 * H * D * bf          # w_out
             + 2 * H * H * bf          # G (group-membership, bf16)
             + tb * H * f              # h scratch
             + 8 * tb * H * f)         # elementwise intermediates headroom
    if resident:
        total += 2 * (nb * H * H * bf + nb * 2 * H * f)
    else:
        total += 2 * (H * H * bf + 2 * H * f)
    return total


def funcmol_forward(y, params, *, n_groups, eps=1e-5, batch_tile=None):
    """FuncMol.forward(y) == MLPResCode(y) (inference)."""
    # bf16 matmul operands (halves weight HBM traffic, native MXU path);
    # GroupNorm affine params stay f32.
    w_in = params["w_in"].astype(jnp.bfloat16)
    w_blk = params["w_blk"].astype(jnp.bfloat16)
    w_out = params["w_out"].astype(jnp.bfloat16)
    gamma = params["gamma"].astype(jnp.float32)
    beta = params["beta"].astype(jnp.float32)

    B, D = y.shape
    H = w_in.shape[1]
    nb = w_blk.shape[0]
    if H % n_groups != 0:
        raise ValueError(f"hidden size {H} not divisible by n_groups {n_groups}")
    gs = H // n_groups

    # ---- batch tiling: >=2 tiles when possible (keeps both v7x TCs busy) ----
    if batch_tile is not None:
        tb = int(batch_tile)
        if tb <= 0 or tb % 8 != 0:
            raise ValueError("batch_tile must be a positive multiple of 8")
    else:
        half = -(-B // 2)                                  # ceil(B / 2)
        tb = min(256, max(8, ((half + 7) // 8) * 8))

    # ---- VMEM budget, weight residency and tile shrink if needed ----
    try:
        vmem_cap = int(pltpu.get_tpu_info().vmem_capacity_bytes)
    except Exception:
        vmem_cap = 64 * 2**20                              # conservative: v7x per-TC

    def _choose(tb_):
        res = _vmem_bytes(tb_, D, H, nb, True) <= int(0.55 * vmem_cap)
        return res, _vmem_bytes(tb_, D, H, nb, res)

    resident, need = _choose(tb)
    while batch_tile is None and need > int(0.6 * vmem_cap) and tb > 8:
        tb = max(8, ((tb // 2) // 8) * 8)
        resident, need = _choose(tb)

    n_bt = -(-B // tb)                                     # ceil
    B_pad = n_bt * tb
    y_in = y if B_pad == B else jnp.pad(y, ((0, B_pad - B), (0, 0)))

    # v7x-safe scoped-VMEM cap (~72% of physical), with a 16 MiB floor.
    vmem_limit = int(min(max(int(1.3 * need), 16 * 2**20), int(0.72 * vmem_cap)))

    # 0/1 group-membership matrix (exact in bf16); 1/gs scaling stays f32 in-kernel.
    ch = jnp.arange(H)
    G = ((ch[:, None] // gs) == (ch[None, :] // gs)).astype(jnp.bfloat16)
    gb = jnp.stack([gamma, beta], axis=1)                  # (nb, 2, H)

    if resident:
        w_blk_spec = pl.BlockSpec((nb, H, H), lambda i, b: (0, 0, 0))
        gb_spec = pl.BlockSpec((nb, 2, H), lambda i, b: (0, 0, 0))
    else:
        w_blk_spec = pl.BlockSpec((None, H, H), lambda i, b: (b, 0, 0))
        gb_spec = pl.BlockSpec((None, 2, H), lambda i, b: (b, 0, 0))

    in_specs = [
        pl.BlockSpec((tb, D), lambda i, b: (i, 0)),        # y tile (resident over b)
        pl.BlockSpec((D, H), lambda i, b: (0, 0)),         # w_in (resident)
        w_blk_spec,                                        # block weights
        gb_spec,                                           # [gamma; beta]
        pl.BlockSpec((H, D), lambda i, b: (0, 0)),         # w_out (resident)
        pl.BlockSpec((H, H), lambda i, b: (0, 0)),         # G (resident)
    ]
    out_specs = pl.BlockSpec((tb, D), lambda i, b: (i, 0))

    flops = int(4 * B_pad * D * H + 6 * nb * B_pad * H * H)
    transcendentals = int(2 * nb * B_pad * H)
    weight_bytes = (D * H + H * D + nb * H * H + H * H) * 2 + nb * 2 * H * 4
    bytes_accessed = int(2 * B_pad * D * 4
                         + weight_bytes * (1 if resident else n_bt))

    kernel = functools.partial(_funcmol_kernel, eps=eps, inv_gs=1.0 / gs,
                               act_dtype=_elementwise_dtype(),
                               w_blk_resident=resident)
    out = pl.pallas_call(
        kernel,
        out_shape=jax.ShapeDtypeStruct((B_pad, D), y.dtype),
        grid=(n_bt, nb),
        in_specs=in_specs,
        out_specs=out_specs,
        scratch_shapes=[pltpu.VMEM((tb, H), jnp.float32)],
        compiler_params=pltpu.CompilerParams(
            dimension_semantics=("parallel", "arbitrary"),
            vmem_limit_bytes=vmem_limit),
        cost_estimate=pl.CostEstimate(flops=flops,
                                      transcendentals=transcendentals,
                                      bytes_accessed=bytes_accessed),
    )(y_in, w_in, w_blk, gb, w_out, G)
    return out[:B] if B_pad != B else out


# ------------------------- pure-JAX reference ------------------------------ #

def funcmol_reference(y, params, *, n_groups, eps=1e-5):
    # same bf16-rounded weights as the kernel; math in f32.
    w_in = params["w_in"].astype(jnp.bfloat16).astype(jnp.float32)
    w_blk = params["w_blk"].astype(jnp.bfloat16).astype(jnp.float32)
    w_out = params["w_out"].astype(jnp.bfloat16).astype(jnp.float32)
    gamma, beta = params["gamma"], params["beta"]

    h = y @ w_in
    B, H = h.shape
    nb = w_blk.shape[0]
    gs = H // n_groups
    for b in range(nb):
        hg = h.reshape(B, n_groups, gs)
        mean = hg.mean(axis=-1, keepdims=True)
        var = hg.var(axis=-1, keepdims=True)              # biased, matches nn.GroupNorm
        xn = ((hg - mean) / jnp.sqrt(var + eps)).reshape(B, H)
        xn = xn * gamma[b][None, :] + beta[b][None, :]
        act = xn * jax.nn.sigmoid(xn)
        h = h + act @ w_blk[b]
    return h @ w_out


# -------------------------------- main ------------------------------------- #

def init_params(key, code_dim, hidden, num_blocks):
    ks = jax.random.split(key, 5 + num_blocks)
    scale_in = 1.0 / jnp.sqrt(code_dim)
    scale_h = 1.0 / jnp.sqrt(hidden)
    w_in = jax.random.normal(ks[0], (code_dim, hidden), jnp.float32) * scale_in
    w_out = jax.random.normal(ks[1], (hidden, code_dim), jnp.float32) * scale_h
    w_blk = jnp.stack([
        jax.random.normal(ks[5 + b], (hidden, hidden), jnp.float32) * scale_h
        for b in range(num_blocks)])
    gamma = 1.0 + 0.1 * jax.random.normal(ks[2], (num_blocks, hidden), jnp.float32)
    beta = 0.1 * jax.random.normal(ks[3], (num_blocks, hidden), jnp.float32)
    return {"w_in": w_in, "w_blk": w_blk, "gamma": gamma, "beta": beta, "w_out": w_out}


if __name__ == "__main__":
    # small config consistent with FuncMol: y is (n_chains, code_dim)
    B = 64           # n_chains / batch
    CODE_DIM = 128   # config['decoder']['code_dim']
    HIDDEN = 256     # config['denoiser']['n_hidden_units']
    NUM_BLOCKS = 3   # config['denoiser']['num_blocks']
    N_GROUPS = 8     # config['denoiser']['n_groups']

    key = jax.random.PRNGKey(0)
    k_y, k_p = jax.random.split(key)
    y = jax.random.normal(k_y, (B, CODE_DIM), jnp.float32)
    params = init_params(k_p, CODE_DIM, HIDDEN, NUM_BLOCKS)

    out = funcmol_forward(y, params, n_groups=N_GROUPS)
    out = jax.block_until_ready(out)

    ref = funcmol_reference(y, params, n_groups=N_GROUPS)
    assert out.shape == (B, CODE_DIM) and out.dtype == jnp.float32
    assert bool(jnp.all(jnp.isfinite(out))), "non-finite output"
    rel_err = float(jnp.linalg.norm(out - ref) / (jnp.linalg.norm(ref) + 1e-8))
    assert rel_err < 3e-2, f"mismatch vs reference (rel_err={rel_err})"

    print("KERNEL_OK")
</pallas_src>

<mosaic_0001>
module attributes {stable_mosaic.version = 11 : i64} {
  func.func @_funcmol_kernel(%arg0: i32, %arg1: i32, %arg2: memref<32x128xf32, #tpu.memory_space<vmem>>, %arg3: memref<128x256xbf16, #tpu.memory_space<vmem>>, %arg4: memref<3x256x256xbf16, #tpu.memory_space<vmem>>, %arg5: memref<3x2x256xf32, #tpu.memory_space<vmem>>, %arg6: memref<256x128xbf16, #tpu.memory_space<vmem>>, %arg7: memref<256x256xbf16, #tpu.memory_space<vmem>>, %arg8: memref<32x128xf32, #tpu.memory_space<vmem>>, %arg9: memref<32x256xf32, #tpu.memory_space<vmem>>) attributes {dimension_semantics = [#tpu.dimension_semantics<parallel>, #tpu.dimension_semantics<arbitrary>], iteration_bounds = array<i64: 2, 3>, scalar_prefetch = 0 : i64, scratch_operands = 1 : i64, tpu.core_type = #tpu.core_type<tc>, window_params = [{transform_indices = @transform_0, window_bounds = array<i64: 32, 128>}, {pipeline_mode = #tpu.pipeline_mode<synchronous>, transform_indices = @transform_1, window_bounds = array<i64: 128, 256>}, {pipeline_mode = #tpu.pipeline_mode<synchronous>, transform_indices = @transform_2, window_bounds = array<i64: 3, 256, 256>}, {pipeline_mode = #tpu.pipeline_mode<synchronous>, transform_indices = @transform_3, window_bounds = array<i64: 3, 2, 256>}, {pipeline_mode = #tpu.pipeline_mode<synchronous>, transform_indices = @transform_4, window_bounds = array<i64: 256, 128>}, {pipeline_mode = #tpu.pipeline_mode<synchronous>, transform_indices = @transform_5, window_bounds = array<i64: 256, 256>}, {transform_indices = @transform_6, window_bounds = array<i64: 32, 128>}]} {
    %c0_i32 = arith.constant 0 : i32
    %0 = arith.cmpi eq, %arg1, %c0_i32 : i32
    %1 = arith.extui %0 : i1 to i32
    %c0_i32_0 = arith.constant 0 : i32
    %2 = arith.cmpi ne, %1, %c0_i32_0 : i32
    scf.if %2 {
      %c0_17 = arith.constant 0 : index
      %c0_18 = arith.constant 0 : index
      %48 = vector.load %arg2[%c0_17, %c0_18] : memref<32x128xf32, #tpu.memory_space<vmem>>, vector<32x128xf32>
      %49 = arith.truncf %48 : vector<32x128xf32> to vector<32x128xbf16>
      %c0_19 = arith.constant 0 : index
      %c0_20 = arith.constant 0 : index
      %50 = vector.load %arg3[%c0_19, %c0_20] : memref<128x256xbf16, #tpu.memory_space<vmem>>, vector<128x256xbf16>
      %cst_21 = arith.constant dense<0.000000e+00> : vector<32x256xf32>
      %51 = tpu.matmul %49, %50, %cst_21 {dimension_numbers = #tpu.dot_dimension_numbers<[1], [0], [0], [1], [0, 0, 1, 1], [], []>} : vector<32x128xbf16>, vector<128x256xbf16>, vector<32x256xf32> -> vector<32x256xf32>
      %c0_22 = arith.constant 0 : index
      %c0_23 = arith.constant 0 : index
      %52 = vector.load %arg9[%c0_22, %c0_23] : memref<32x256xf32, #tpu.memory_space<vmem>>, vector<32x256xf32>
      tpu.vector_store %arg9[%c0_22, %c0_23], %51 {strides = array<i32>} : memref<32x256xf32, #tpu.memory_space<vmem>>, vector<32x256xf32>,
    } else {
    }
    %c0 = arith.constant 0 : index
    %c0_1 = arith.constant 0 : index
    %3 = vector.load %arg9[%c0, %c0_1] : memref<32x256xf32, #tpu.memory_space<vmem>>, vector<32x256xf32>
    %4 = arith.index_cast %arg1 : i32 to index
    %c0_2 = arith.constant 0 : index
    %c0_3 = arith.constant 0 : index
    %5 = vector.load %arg4[%4, %c0_2, %c0_3] : memref<3x256x256xbf16, #tpu.memory_space<vmem>>, vector<1x256x256xbf16>
    %6 = vector.shape_cast %5 : vector<1x256x256xbf16> to vector<256x256xbf16>
    %7 = arith.index_cast %arg1 : i32 to index
    %c0_4 = arith.constant 0 : index
    %c0_5 = arith.constant 0 : index
    %8 = vector.load %arg5[%7, %c0_4, %c0_5] : memref<3x2x256xf32, #tpu.memory_space<vmem>>, vector<1x2x256xf32>
    %9 = vector.shape_cast %8 : vector<1x2x256xf32> to vector<2x256xf32>
    %10 = vector.extract_strided_slice %9 {offsets = [0, 0], sizes = [1, 256], strides = [1, 1]} : vector<2x256xf32> to vector<1x256xf32>
    %11 = vector.shape_cast %10 : vector<1x256xf32> to vector<256xf32>
    %12 = vector.shape_cast %11 : vector<256xf32> to vector<1x256xf32>
    %13 = vector.extract_strided_slice %9 {offsets = [1, 0], sizes = [1, 256], strides = [1, 1]} : vector<2x256xf32> to vector<1x256xf32>
    %14 = vector.shape_cast %13 : vector<1x256xf32> to vector<256xf32>
    %15 = vector.shape_cast %14 : vector<256xf32> to vector<1x256xf32>
    %c0_6 = arith.constant 0 : index
    %c0_7 = arith.constant 0 : index
    %16 = vector.load %arg7[%c0_6, %c0_7] : memref<256x256xbf16, #tpu.memory_space<vmem>>, vector<256x256xbf16>
    %17 = arith.truncf %3 : vector<32x256xf32> to vector<32x256xbf16>
    %cst = arith.constant dense<0.000000e+00> : vector<32x256xf32>
    %18 = tpu.matmul %17, %16, %cst {dimension_numbers = #tpu.dot_dimension_numbers<[1], [0], [0], [1], [0, 0, 1, 1], [], []>} : vector<32x256xbf16>, vector<256x256xbf16>, vector<32x256xf32> -> vector<32x256xf32>
    %cst_8 = arith.constant 3.125000e-02 : f32
    %19 = vector.broadcast %cst_8 : f32 to vector<32x256xf32>
    %20 = arith.mulf %18, %19 : vector<32x256xf32>
    %21 = arith.subf %3, %20 : vector<32x256xf32>
    %22 = arith.mulf %21, %21 : vector<32x256xf32>
    %23 = arith.truncf %22 : vector<32x256xf32> to vector<32x256xbf16>
    %cst_9 = arith.constant dense<0.000000e+00> : vector<32x256xf32>
    %24 = tpu.matmul %23, %16, %cst_9 {dimension_numbers = #tpu.dot_dimension_numbers<[1], [0], [0], [1], [0, 0, 1, 1], [], []>} : vector<32x256xbf16>, vector<256x256xbf16>, vector<32x256xf32> -> vector<32x256xf32>
    %cst_10 = arith.constant 3.125000e-02 : f32
    %25 = vector.broadcast %cst_10 : f32 to vector<32x256xf32>
    %26 = arith.mulf %24, %25 : vector<32x256xf32>
    %cst_11 = arith.constant 9.99999974E-6 : f32
    %27 = vector.broadcast %cst_11 : f32 to vector<32x256xf32>
    %28 = arith.addf %26, %27 : vector<32x256xf32>
    %29 = math.rsqrt %28 : vector<32x256xf32>
    %30 = arith.mulf %21, %29 : vector<32x256xf32>
    %31 = vector.broadcast %12 : vector<1x256xf32> to vector<32x256xf32>
    %32 = arith.mulf %30, %31 : vector<32x256xf32>
    %33 = vector.broadcast %15 : vector<1x256xf32> to vector<32x256xf32>
    %34 = arith.addf %32, %33 : vector<32x256xf32>
    %35 = arith.truncf %34 : vector<32x256xf32> to vector<32x256xbf16>
    %36 = arith.negf %35 : vector<32x256xbf16>
    %37 = math.exp %36 : vector<32x256xbf16>
    %cst_12 = arith.constant 1.000000e+00 : bf16
    %38 = vector.broadcast %cst_12 : bf16 to vector<32x256xbf16>
    %39 = arith.addf %38, %37 : vector<32x256xbf16>
    %40 = arith.divf %38, %39 : vector<32x256xbf16>
    %41 = arith.mulf %35, %40 : vector<32x256xbf16>
    %cst_13 = arith.constant dense<0.000000e+00> : vector<32x256xf32>
    %42 = tpu.matmul %41, %6, %cst_13 {dimension_numbers = #tpu.dot_dimension_numbers<[1], [0], [0], [1], [0, 0, 1, 1], [], []>} : vector<32x256xbf16>, vector<256x256xbf16>, vector<32x256xf32> -> vector<32x256xf32>
    %43 = arith.addf %3, %42 : vector<32x256xf32>
    %c0_14 = arith.constant 0 : index
    %c0_15 = arith.constant 0 : index
    %44 = vector.load %arg9[%c0_14, %c0_15] : memref<32x256xf32, #tpu.memory_space<vmem>>, vector<32x256xf32>
    tpu.vector_store %arg9[%c0_14, %c0_15], %43 {strides = array<i32>} : memref<32x256xf32, #tpu.memory_space<vmem>>, vector<32x256xf32>,
    %c2_i32 = arith.constant 2 : i32
    %45 = arith.cmpi eq, %arg1, %c2_i32 : i32
    %46 = arith.extui %45 : i1 to i32
    %c0_i32_16 = arith.constant 0 : i32
    %47 = arith.cmpi ne, %46, %c0_i32_16 : i32
    scf.if %47 {
      %48 = arith.truncf %43 : vector<32x256xf32> to vector<32x256xbf16>
      %c0_17 = arith.constant 0 : index
      %c0_18 = arith.constant 0 : index
      %49 = vector.load %arg6[%c0_17, %c0_18] : memref<256x128xbf16, #tpu.memory_space<vmem>>, vector<256x128xbf16>
      %cst_19 = arith.constant dense<0.000000e+00> : vector<32x128xf32>
      %50 = tpu.matmul %48, %49, %cst_19 {dimension_numbers = #tpu.dot_dimension_numbers<[1], [0], [0], [1], [0, 0, 1, 1], [], []>} : vector<32x256xbf16>, vector<256x128xbf16>, vector<32x128xf32> -> vector<32x128xf32>
      %c0_20 = arith.constant 0 : index
      %c0_21 = arith.constant 0 : index
      %51 = vector.load %arg8[%c0_20, %c0_21] : memref<32x128xf32, #tpu.memory_space<vmem>>, vector<32x128xf32>
      tpu.vector_store %arg8[%c0_20, %c0_21], %50 {strides = array<i32>} : memref<32x128xf32, #tpu.memory_space<vmem>>, vector<32x128xf32>,
    } else {
    }
    return
  }
  func.func @transform_0(%arg0: i32, %arg1: i32) -> (i32, i32) {
    %c0_i32 = arith.constant 0 : i32
    %c0_i32_0 = arith.constant 0 : i32
    return %arg0, %c0_i32 : i32, i32
  }
  func.func @transform_1(%arg0: i32, %arg1: i32) -> (i32, i32) {
    %c0_i32 = arith.constant 0 : i32
    %c0_i32_0 = arith.constant 0 : i32
    %c0_i32_1 = arith.constant 0 : i32
    return %c0_i32, %c0_i32_0 : i32, i32
  }
  func.func @transform_2(%arg0: i32, %arg1: i32) -> (i32, i32, i32) {
    %c0_i32 = arith.constant 0 : i32
    %c0_i32_0 = arith.constant 0 : i32
    %c0_i32_1 = arith.constant 0 : i32
    %c0_i32_2 = arith.constant 0 : i32
    return %c0_i32, %c0_i32_0, %c0_i32_1 : i32, i32, i32
  }
  func.func @transform_3(%arg0: i32, %arg1: i32) -> (i32, i32, i32) {
    %c0_i32 = arith.constant 0 : i32
    %c0_i32_0 = arith.constant 0 : i32
    %c0_i32_1 = arith.constant 0 : i32
    %c0_i32_2 = arith.constant 0 : i32
    return %c0_i32, %c0_i32_0, %c0_i32_1 : i32, i32, i32
  }
  func.func @transform_4(%arg0: i32, %arg1: i32) -> (i32, i32) {
    %c0_i32 = arith.constant 0 : i32
    %c0_i32_0 = arith.constant 0 : i32
    %c0_i32_1 = arith.constant 0 : i32
    return %c0_i32, %c0_i32_0 : i32, i32
  }
  func.func @transform_5(%arg0: i32, %arg1: i32) -> (i32, i32) {
    %c0_i32 = arith.constant 0 : i32
    %c0_i32_0 = arith.constant 0 : i32
    %c0_i32_1 = arith.constant 0 : i32
    return %c0_i32, %c0_i32_0 : i32, i32
  }
  func.func @transform_6(%arg0: i32, %arg1: i32) -> (i32, i32) {
    %c0_i32 = arith.constant 0 : i32
    %c0_i32_0 = arith.constant 0 : i32
    return %arg0, %c0_i32 : i32, i32
  }
}

</mosaic_0001>

<bundles_post_ra>
// kernel: tpu_custom_call.1
= control target key start
LH: loop header
LB: loop body
LE: loop exit
PB: predicated region body
PF: predicated region fallthrough
CT: control target
= control target key end

     0   :  { %s2956_s0 = inlined_call_operand.hbm [shape: f32[64,128], index: 0, kind: input, shape index: {}]   ;;  %s2957_s1 = inlined_call_operand.hbm [shape: bf16[128,256], index: 1, kind: input, shape index: {}]   ;;  %s2958_s2 = inlined_call_operand.hbm [shape: bf16[3,256,256], index: 2, kind: input, shape index: {}]   ;;  %s2959_s3 = inlined_call_operand.hbm [shape: f32[3,2,256], index: 3, kind: input, shape index: {}]   ;;  %s2960_s4 = inlined_call_operand.hbm [shape: bf16[256,128], index: 4, kind: input, shape index: {}]   ;;  %s2961_s5 = inlined_call_operand.hbm [shape: bf16[256,256], index: 5, kind: input, shape index: {}]   ;;  %s2962_s6 = inlined_call_operand.hbm [shape: f32[64,128], index: 6, kind: output, shape index: {}]  }
   0x1   :  { %2974 = sst [smem:[#allocation20_spill]] %s2957_s1 }
   0x2   :  { %2975 = sst [smem:[#allocation21_spill]] %s2958_s2 }
   0x3   :  { %2976 = sst [smem:[#allocation22_spill]] %s2959_s3 }
   0x4   :  { %2977 = sst [smem:[#allocation23_spill]] %s2960_s4 }
   0x5   :  { %2978 = sst [smem:[#allocation24_spill]] %s2962_s6 }
   0x6   :  { %11 = vsyncpa [#allocation4], 0 }
   0x7   :  { %13 = vsyncpa [#allocation4 + $0x1], 0 }
   0x8   :  { %14 = vsyncpa [#allocation7], 0 }
   0x9   :  { %15 = vsyncpa [#allocation10], 0 }
   0xa   :  { %16 = vsyncpa [#allocation13], 0 }
   0xb   :  { %17 = vsyncpa [#allocation5], 0 }
   0xc   :  { %19 = vsyncpa [#allocation5 + $0x1], 0  ;;  %s2454_s21 = smov 0   ;;  %s2456_s22 = smov 0  }
   0xd   :  { %s2458_s23 = smov 0   ;;  %s2460_s24 = smov 0  }
   0xe   :  { %s2462_s25 = smov 0   ;;  %s2464_s26 = smov 0  }
   0xf   :  { %s2466_s27 = smov 0   ;;  %s2468_s28 = smov 0  }
  0x10 LB: > { %s2966_s29 = sadd.s32 4294967295, %s2403_s28   ;;  %p1594_p0 = scmp.ge.s32.totalorder %s2403_s28, 1  ;;  %s2403_s28 = sphi %s2468_s28, %s25_s28   ;;  %s2399_s27 = sphi %s2466_s27, %s3008_s27   ;;  %s2395_s26 = sphi %s2464_s26, %s3007_s26   ;;  %s2391_s25 = sphi %s2462_s25, %s3006_s25   ;;  %s2387_s24 = sphi %s2460_s24, %s3005_s24   ;;  %s2383_s23 = sphi %s2458_s23, %s3004_s23   ;;  %s2379_s22 = sphi %s2456_s22, %s3003_s22   ;;  %s2375_s21 = sphi %s2454_s21, %s3002_s21  }
  0x11   : > { %p2498_p1 = scmp.eq.s32.totalorder %s2966_s29, 0  ;;  %p199_p2 = scmp.lt.s32.totalorder %s2403_s28, 7 }
  0x12   : > { %s2405_s8 = smov [#allocation6]   ;;  %s2406_s11 = smov [#allocation9]  }
  0x13   : > { %s2979_s30 = scalar_select %p2498_p1, 1, 0 }
  0x14   : > { %p2503_p3 = pnand %p1594_p0, %p199_p2  ;;  %s211_s9 = sshll.u32 %s2405_s8, 4  ;;  %s212_s9 = int_to_ptr.vmem [resolvable:$true] %s211_s9 }
  0x15   : > { %s237_s12 = sshll.u32 %s2406_s11, 4  ;;  %s2982_s1 = sld [smem:[#allocation20_spill]]  ;;  %s2515_s12 = int_to_ptr.vmem [resolvable:$true] %s237_s12 }
  0x16   : > { %s2980_s7 = scalar_select %p2503_p3, 1, 0 }
  0x17   : > { %p1843_p4 = pneg %p2503_p3 }
  0x19   : > { %p2511_p5 = pnand %p1843_p4, %p2498_p1 }
  0x1b   : > { %s2123_s15 = scalar_lea.hbm %s2982_s1, 2048  ;;  %p2525_p7 = pneg %p2511_p5 }
  0x1c   : > { %p2124_p6 = scmp.ne.s32.totalorder %s2982_s1, %s2123_s15  ;;  %p2130_p10 = scmp.lt.u32.totalorder %s2123_s15, %s2982_s1 }
  0x1e   : > { %p2126_p8 = pnand %p2525_p7, %p2124_p6 }
  0x20   : > { %p2127_p9 = pneg %p2126_p8 }
  0x22   : > { %p2132_p11 = pnand %p2130_p10, %p2127_p9 }
  0x24   : > { %2135 = shalt.err (!%p2132_p11)
}
  0x25   : > { %s2136_s8 = scalar_lea.vmem %s212_s9, 2048  ;;  %p2144_p2 = scmp.lt.s32.totalorder %s212_s9, %s212_s9 }
  0x26   : > { %p2137_p12 = scmp.ne.s32.totalorder %s212_s9, %s2136_s8  ;;  %p2145_p4 = scmp.lt.s32.totalorder %s2136_s8, %s2136_s8 }
  0x28   : > { %p2139_p13 = pnand %p2137_p12, %p2525_p7  ;;  %p2146_p3 = por %p2145_p4, %p2144_p2 }
  0x2a   : > { %p2140_p0 = pneg %p2139_p13 }
  0x2c   : > { %p2147_p1 = pnand %p2146_p3, %p2140_p0 }
  0x2e   : > { %2150 = shalt.err (!%p2147_p1)
}
  0x2f   : > { %s2968_s11 = smov 128   ;;  %s2970_s13 = smov 8  }
  0x30   : > { %1846 = dma.hbm_to_vmem [thread:$0]  (!%p2511_p5), %s2982_s1, 2048, %s212_s9, [#allocation7], %s2968_s11, %s2968_s11, %s2970_s13  }
  0x31   : > { %s2984_s3 = sld [smem:[#allocation22_spill]] }
  0x37   : > { %s2151_s19 = scalar_lea.hbm %s2984_s3, 192 }
  0x38   : > { %p2152_p1 = scmp.ne.s32.totalorder %s2984_s3, %s2151_s19  ;;  %p2158_p8 = scmp.lt.u32.totalorder %s2151_s19, %s2984_s3 }
  0x3a   : > { %p2154_p3 = pnand %p2152_p1, %p2525_p7 }
  0x3c   : > { %p2155_p6 = pneg %p2154_p3 }
  0x3e   : > { %p2160_p9 = pnand %p2158_p8, %p2155_p6 }
  0x40   : > { %2163 = shalt.err (!%p2160_p9)
}
  0x41   : > { %s2164_s9 = scalar_lea.vmem %s2515_s12, 192  ;;  %p2172_p13 = scmp.lt.s32.totalorder %s2515_s12, %s2515_s12 }
  0x42   : > { %p2165_p10 = scmp.ne.s32.totalorder %s2515_s12, %s2164_s9  ;;  %p2173_p0 = scmp.lt.s32.totalorder %s2164_s9, %s2164_s9 }
  0x44   : > { %p2167_p11 = pnand %p2165_p10, %p2525_p7  ;;  %p2174_p2 = por %p2173_p0, %p2172_p13 }
  0x46   : > { %p2168_p12 = pneg %p2167_p11 }
  0x48   : > { %p2175_p4 = pnand %p2174_p2, %p2168_p12 }
  0x4a   : > { %2178 = shalt.err (!%p2175_p4)
}
  0x4b   : > { %s2972_s14 = smov 64   ;;  %s2410_s6 = smov 4  }
  0x4c   : > { %1852 = dma.hbm_to_vmem [thread:$0]  (!%p2511_p5), %s2984_s3, 192, %s2515_s12, [#allocation10], %s2972_s14, %s2972_s14, %s2410_s6  }
  0x4d   : > { %s2411_s16 = smov [#allocation8]   ;;  %s2412_s19 = smov [#allocation11]  }
  0x4e   : > { %s224_s17 = sshll.u32 %s2411_s16, 4  ;;  %s250_s20 = sshll.u32 %s2412_s19, 4  ;;  %s225_s17 = int_to_ptr.vmem [resolvable:$true] %s224_s17  ;;  %s2570_s20 = int_to_ptr.vmem [resolvable:$true] %s250_s20 }
  0x4f   : > { %s2985_s2 = sld [smem:[#allocation21_spill]] }
  0x55   : > { %s2179_s11 = scalar_lea.hbm %s2985_s2, 12288 }
  0x56   : > { %p2180_p1 = scmp.ne.s32.totalorder %s2985_s2, %s2179_s11  ;;  %p2186_p8 = scmp.lt.u32.totalorder %s2179_s11, %s2985_s2 }
  0x58   : > { %p2182_p3 = pnand %p2180_p1, %p2525_p7 }
  0x5a   : > { %p2183_p6 = pneg %p2182_p3 }
  0x5c   : > { %p2188_p9 = pnand %p2186_p8, %p2183_p6 }
  0x5e   : > { %2191 = shalt.err (!%p2188_p9)
}
  0x5f   : > { %s2192_s15 = scalar_lea.vmem %s225_s17, 12288  ;;  %p2200_p13 = scmp.lt.s32.totalorder %s225_s17, %s225_s17 }
  0x60   : > { %p2193_p10 = scmp.ne.s32.totalorder %s225_s17, %s2192_s15  ;;  %p2201_p0 = scmp.lt.s32.totalorder %s2192_s15, %s2192_s15 }
  0x62   : > { %p2195_p11 = pnand %p2193_p10, %p2525_p7  ;;  %p2202_p2 = por %p2201_p0, %p2200_p13 }
  0x64   : > { %p2196_p12 = pneg %p2195_p11 }
  0x66   : > { %p2203_p4 = pnand %p2202_p2, %p2196_p12 }
  0x68   : > { %2206 = shalt.err (!%p2203_p4)
}
  0x69   : > { %s2986_s1 = smov 8   ;;  %s2987_s13 = smov 128  }
  0x6a   : > { %1849 = dma.hbm_to_vmem [thread:$0]  (!%p2511_p5), %s2985_s2, 12288, %s225_s17, [#allocation7], %s2987_s13, %s2987_s13, %s2986_s1  }
  0x6b   : > { %s2988_s4 = sld [smem:[#allocation23_spill]] }
  0x71   : > { %s2207_s9 = scalar_lea.hbm %s2988_s4, 2048 }
  0x72   : > { %p2208_p1 = scmp.ne.s32.totalorder %s2988_s4, %s2207_s9  ;;  %p2214_p8 = scmp.lt.u32.totalorder %s2207_s9, %s2988_s4 }
  0x74   : > { %p2210_p3 = pnand %p2208_p1, %p2525_p7 }
  0x76   : > { %p2211_p6 = pneg %p2210_p3 }
  0x78   : > { %p2216_p9 = pnand %p2214_p8, %p2211_p6 }
  0x7a   : > { %2219 = shalt.err (!%p2216_p9)
}
  0x7b   : > { %s2220_s17 = scalar_lea.vmem %s2570_s20, 2048  ;;  %p2228_p13 = scmp.lt.s32.totalorder %s2570_s20, %s2570_s20 }
  0x7c   : > { %p2221_p10 = scmp.ne.s32.totalorder %s2570_s20, %s2220_s17  ;;  %p2229_p0 = scmp.lt.s32.totalorder %s2220_s17, %s2220_s17 }
  0x7e   : > { %p2223_p11 = pnand %p2221_p10, %p2525_p7  ;;  %p2230_p2 = por %p2229_p0, %p2228_p13 }
  0x80   : > { %p2224_p12 = pneg %p2223_p11 }
  0x82   : > { %p2231_p4 = pnand %p2230_p2, %p2224_p12 }
  0x84   : > { %2234 = shalt.err (!%p2231_p4)
}
  0x85   : > { %s2989_s14 = smov 64   ;;  %s2413_s19 = smov [#allocation12]  }
  0x86   : > { %1855 = dma.hbm_to_vmem [thread:$0]  (!%p2511_p5), %s2988_s4, 2048, %s2570_s20, [#allocation10], %s2989_s14, %s2989_s14, %s2410_s6  }
  0x87   : > { %s263_s8 = sshll.u32 %s2413_s19, 4  ;;  %s2235_s12 = scalar_lea.hbm %s2961_s5, 4096  ;;  %s264_s8 = int_to_ptr.vmem [resolvable:$true] %s263_s8 }
  0x88   : > { %p2236_p1 = scmp.ne.s32.totalorder %s2961_s5, %s2235_s12  ;;  %p2242_p8 = scmp.lt.u32.totalorder %s2235_s12, %s2961_s5 }
  0x8a   : > { %p2238_p3 = pnand %p2236_p1, %p2525_p7 }
  0x8c   : > { %p2239_p6 = pneg %p2238_p3 }
  0x8e   : > { %p2244_p9 = pnand %p2242_p8, %p2239_p6 }
  0x90   : > { %2247 = shalt.err (!%p2244_p9)
}
  0x91   : > { %s2248_s6 = scalar_lea.vmem %s264_s8, 4096  ;;  %p2256_p13 = scmp.lt.s32.totalorder %s264_s8, %s264_s8 }
  0x92   : > { %p2249_p10 = scmp.ne.s32.totalorder %s264_s8, %s2248_s6  ;;  %p2257_p0 = scmp.lt.s32.totalorder %s2248_s6, %s2248_s6 }
  0x94   : > { %p2251_p11 = pnand %p2249_p10, %p2525_p7  ;;  %p2258_p2 = por %p2257_p0, %p2256_p13 }
  0x96   : > { %p2252_p12 = pneg %p2251_p11 }
  0x98   : > { %p2259_p4 = pnand %p2258_p2, %p2252_p12 }
  0x9a   : > { %2262 = shalt.err (!%p2259_p4)
}
  0x9b   : > { %1858 = dma.hbm_to_vmem [thread:$0]  (!%p2511_p5), %s2961_s5, 4096, %s264_s8, [#allocation13], %s2987_s13, %s2987_s13, %s2986_s1  }
  0x9c   : > { %s1593_s10 = sadd.s32 4294967294, %s2403_s28   ;;  %s34_s18 = sadd.s32 1, %s2395_s26 }
  0x9d   : > { %s37_s20 = sadd.s32 1, %s2399_s27  ;;  %p35_p7 = scmp.ge.s32.totalorder %s34_s18, 3 }
  0x9e   : > { %s44_s14 = sadd.s32 1, %s2383_s23  ;;  %p51_p1 = scmp.ne.s32.totalorder %s2383_s23, %s2379_s22 }
  0x9f   : > { %p52_p3 = scmp.eq.s32.totalorder %s2403_s28, 0  ;;  %s3010_s18 = smov (%p35_p7, %s34_s18), 0 }
  0xa0   : > { %s3012_s20 = smov (!%p35_p7, %s37_s20), %s2399_s27  ;;  %p57_p5 = scmp.ne.s32.totalorder %s2379_s22, %s2375_s21 }
  0xa1   : > { %p2650_p6 = por %p52_p3, %p51_p1  ;;  %p39_p8 = scmp.ge.s32.totalorder %s3012_s20, 2 }
  0xa2   : > { %s2991_s11 = sadd.s32 4294967295, %s2403_s28   ;;  %p2992_p10 = scmp.ne.s32.totalorder %s2979_s30, 0 }
  0xa3   : > { %p186_p9 = scmp.eq.s32.totalorder %s2991_s11, 5  ;;  %p192_p12 = scmp.eq.s32.totalorder %s1593_s10, 5 }
  0xa4   : > { %p2660_p11 = por %p2992_p10, %p57_p5  ;;  %s3014_s20 = smov (%p39_p8, %s3012_s20), 0 }
  0xa5   : > { %p2666_p13 = por %p186_p9, %p51_p1  ;;  %p2670_p0 = por %p192_p12, %p57_p5 }
  0xa6   : > { %s41_s29 = ssub.s32 %s2399_s27, %s3014_s20  ;;  %p1872_p2 = scmp.lt.s32.totalorder %s2403_s28, 6 }
  0xa7   : > { %s2994_s8 = scalar_select %p2666_p13, 1, 0 }
  0xa8   : > { %s2995_s9 = scalar_select %p2670_p0, 1, 0 }
  0xa9   : > { %p42_p4 = scmp.eq.s32.totalorder %s41_s29, 0  ;;  %s277_s12 = sand.u32 1, %s2383_s23  }
  0xaa   : > { %s1601_s15 = sshll.u32 %s277_s12, 5  ;;  %s1723_s6 = sshll.u32 %s2399_s27, 9 }
  0xab   : > { %s2679_s17 = scalar_select %p42_p4, %s2383_s23, %s44_s14  }
  0xac   : > { %s2685_s10 = scalar_lea.hbm %s2956_s0, %s1723_s6  ;;  %s281_s11 = scalar_lea.vmem [#allocation3], %s1601_s15 }
  0xad   : > { %s288_s4 = sshll.u32 %s281_s11, 4  ;;  %p2691_p7 = pnand %p1872_p2, %p2650_p6  ;;  %s2687_s4 = int_to_ptr.vmem [resolvable:$true] %s288_s4 }
  0xae   : > { %s2695_s14 = scalar_lea.sflag [#allocation4], %s277_s12  ;;  %s2263_s2 = scalar_lea.hbm %s2685_s10, 512 }
  0xaf   : > { %p2264_p1 = scmp.ne.s32.totalorder %s2685_s10, %s2263_s2  ;;  %p2265_p3 = pneg %p2691_p7 }
  0xb0   : > { %s2268_s16 = scalar_lea.hbm %s2956_s0, 1024  ;;  %p2269_p6 = scmp.lt.u32.totalorder %s2685_s10, %s2956_s0 }
  0xb1   : > { %p2266_p5 = pnand %p2265_p3, %p2264_p1  ;;  %p2270_p9 = scmp.lt.u32.totalorder %s2268_s16, %s2263_s2 }
  0xb2   : > { %p2272_p12 = scmp.lt.u32.totalorder %s2263_s2, %s2685_s10 }
  0xb3   : > { %p2267_p8 = pneg %p2266_p5  ;;  %p2271_p10 = por %p2270_p9, %p2269_p6 }
  0xb5   : > { %p2273_p2 = por %p2272_p12, %p2271_p10 }
  0xb7   : > { %p2274_p4 = pnand %p2273_p2, %p2267_p8 }
  0xb9   : > { %2277 = shalt.err (!%p2274_p4)
}
  0xba   : > { %s2278_s12 = scalar_lea.vmem %s2687_s4, 512  ;;  %s2414_s15 = smov [#allocation3]  }
  0xbb   : > { %p2279_p1 = scmp.ne.s32.totalorder %s2687_s4, %s2278_s12  ;;  %s2283_s6 = sshll.u32 %s2414_s15, 4  ;;  %s2284_s6 = int_to_ptr.vmem [resolvable:$false] %s2283_s6 }
  0xbc   : > { %s2285_s3 = scalar_lea.vmem %s2284_s6, 1024  ;;  %p2286_p13 = scmp.lt.s32.totalorder %s2687_s4, %s2284_s6 }
  0xbd   : > { %p2281_p5 = pnand %p2279_p1, %p2265_p3  ;;  %p2287_p6 = scmp.lt.s32.totalorder %s2285_s3, %s2278_s12 }
  0xbf   : > { %p2282_p0 = pneg %p2281_p5  ;;  %p2288_p9 = por %p2287_p6, %p2286_p13 }
  0xc1   : > { %p2289_p10 = pnand %p2288_p9, %p2282_p0 }
  0xc3   : > { %2292 = shalt.err (!%p2289_p10)
}
  0xc4   : > { %1862 = dma.hbm_to_vmem [thread:$0]  (!%p2691_p7), %s2685_s10, 512, %s2687_s4, %s2695_s14, %s2987_s13, %s2987_s13, %s2986_s1  }
  0xc5   : > { %p2997_p3 = scmp.ne.s32.totalorder %s2980_s7, 0 }
  0xc6   : > { %s2729_s2 = sand.u32 (!%p2997_p3), 1, %s2379_s22  }
  0xc7   : > { %300 = sbr.rel (%p2997_p3) target bundleno = 1523 (0x5f3), region = 44  ;;  %s1605_s16 = sshll.u32 (!%p2997_p3), %s2729_s2, 5 }
  0xc8   : > { %s303_s11 = scalar_lea.sflag (!%p2997_p3), [#allocation4], %s2729_s2  ;;  %s2733_s12 = scalar_lea.vmem (!%p2997_p3), [#allocation3], %s1605_s16 }
  0xce   : > { %2354 = dma.done.wait (%p2660_p11), %s303_s11, 512  }
  0xcf   : > { %2356 = vsyncadd (%p2660_p11), %s303_s11, 4294966784  ;;  %p2998_p13 = scmp.ne.s32.totalorder %s2979_s30, 0 }
  0xd1   : > { %2358 = dma.done.wait (%p2998_p13), [#allocation7], 14336  }
  0xd2   : > { %2360 = vsyncadd (%p2998_p13), [#allocation7], 4294952960 }
  0xd3   : > { %2362 = dma.done.wait (%p2998_p13), [#allocation10], 2240  }
  0xd4   : > { %2364 = vsyncadd (%p2998_p13), [#allocation10], 4294965056 }
  0xd5   : > { %2366 = dma.done.wait (%p2998_p13), [#allocation13], 4096  }
  0xd6   : > { %2368 = vsyncadd (%p2998_p13), [#allocation13], 4294963200  ;;  %s2751_s4 = scalar_lea.vmem [#allocation14], %s1605_s16  ;;  %p1612_p11 = scmp.ne.s32.totalorder %s2387_s24, 0 }
  0xd7   : > { %v1955_v0 = vld [vmem:[#allocation6 + $0x4] ss:$8 sps:$4 sm:$0xff] (!%p1612_p11)   ;;  %v1957_v1 = vld [vmem:[#allocation6] ss:$8 sps:$4 sm:$0xff] (!%p1612_p11)   ;;  %v2415_v2 = vmov (!%p1612_p11), 0   ;;  %v365_v19 = vld [vmem:[%s2733_s12 + $0x10] sm:$0xff] (!%p1612_p11) }
  0xd8   : > { %362 = sbr.rel (%p1612_p11) target bundleno = 465 (0x1d1), region = 72  ;;  %497 = vmatprep.mubr.bf16.mxu0 (!%p1612_p11), %v2415_v2  ;;  %507 = vmatprep.mubr.bf16.mxu1 (!%p1612_p11), %v2415_v2  ;;  %v1958_v3 = vld [vmem:[#allocation6 + $0x14] ss:$8 sps:$4 sm:$0xff] (!%p1612_p11)   ;;  %v1960_v4 = vld [vmem:[#allocation6 + $0x10] ss:$8 sps:$4 sm:$0xff] (!%p1612_p11)   ;;  %v363_v17 = vld [vmem:[%s2733_s12] sm:$0xff] (!%p1612_p11) }
  0xd9   : > { %465 = vmatprep.subr.bf16.mxu0 (!%p1612_p11), %v1955_v0  ;;  %1755 = vmatprep.subr.bf16.mxu1 (!%p1612_p11), %v1955_v0  ;;  %v1961_v5 = vld [vmem:[#allocation6 + $0x24] ss:$8 sps:$4 sm:$0xff] (!%p1612_p11)   ;;  %v1963_v6 = vld [vmem:[#allocation6 + $0x20] ss:$8 sps:$4 sm:$0xff] (!%p1612_p11)   ;;  %v1964_v7 = vld [vmem:[#allocation6 + $0x34] ss:$8 sps:$4 sm:$0xff] (!%p1612_p11)  }
  0xda   : > { %466 = vmatpush1.bf16.msra.mxu0 (!%p1612_p11), %v1957_v1  ;;  %1763 = vmatpush1.bf16.msra.mxu1 (!%p1612_p11), %v1957_v1  ;;  %v1966_v8 = vld [vmem:[#allocation6 + $0x30] ss:$8 sps:$4 sm:$0xff] (!%p1612_p11)   ;;  %v1967_v9 = vld [vmem:[#allocation6 + $0x44] ss:$8 sps:$4 sm:$0xff] (!%p1612_p11)   ;;  %v1969_v10 = vld [vmem:[#allocation6 + $0x40] ss:$8 sps:$4 sm:$0xff] (!%p1612_p11)  }
  0xdb   : > { %467 = vmatprep.subr.bf16.mxu0 (!%p1612_p11), %v1958_v3  ;;  %1756 = vmatprep.subr.bf16.mxu1 (!%p1612_p11), %v1958_v3  ;;  %v1970_v11 = vld [vmem:[#allocation6 + $0x54] ss:$8 sps:$4 sm:$0xff] (!%p1612_p11)   ;;  %v1972_v12 = vld [vmem:[#allocation6 + $0x50] ss:$8 sps:$4 sm:$0xff] (!%p1612_p11)   ;;  %v1973_v13 = vld [vmem:[#allocation6 + $0x64] ss:$8 sps:$4 sm:$0xff] (!%p1612_p11)  }
  0xdc   : > { %v1975_v14 = vld [vmem:[#allocation6 + $0x60] ss:$8 sps:$4 sm:$0xff] (!%p1612_p11)   ;;  %v1976_v15 = vld [vmem:[#allocation6 + $0x74] ss:$8 sps:$4 sm:$0xff] (!%p1612_p11)   ;;  %v1978_v16 = vld [vmem:[#allocation6 + $0x70] ss:$8 sps:$4 sm:$0xff] (!%p1612_p11)  }
  0xdd   : > { %v364_v18 = vld [vmem:[%s2733_s12 + $0x8] sm:$0xff] (!%p1612_p11)  ;;  %v366_v20 = vld [vmem:[%s2733_s12 + $0x18] sm:$0xff] (!%p1612_p11) }
  0xde   : > { %468 = vmatpush1.bf16.msra.mxu0 (!%p1612_p11), %v1960_v4  ;;  %1764 = vmatpush1.bf16.msra.mxu1 (!%p1612_p11), %v1960_v4  ;;  %v367_v21 = vpack.c.bf16 (!%p1612_p11), %v364_v18, %v363_v17  ;;  %v368_v22 = vpack.c.bf16 (!%p1612_p11), %v366_v20, %v365_v19 }
  0xdf   : > { %469 = vmatprep.subr.bf16.mxu0 %v1961_v5  ;;  %1757 = vmatprep.subr.bf16.mxu1 %v1961_v5 }
  0xe2   : > { %470 = vmatpush1.bf16.msra.mxu0 %v1963_v6  ;;  %1765 = vmatpush1.bf16.msra.mxu1 %v1963_v6 }
  0xe3   : > { %471 = vmatprep.subr.bf16.mxu0 %v1964_v7  ;;  %1758 = vmatprep.subr.bf16.mxu1 %v1964_v7 }
  0xe6   : > { %472 = vmatpush1.bf16.msra.mxu0 %v1966_v8  ;;  %1766 = vmatpush1.bf16.msra.mxu1 %v1966_v8 }
  0xe7   : > { %473 = vmatprep.subr.bf16.mxu0 %v1967_v9  ;;  %1759 = vmatprep.subr.bf16.mxu1 %v1967_v9 }
  0xea   : > { %474 = vmatpush1.bf16.msra.mxu0 %v1969_v10  ;;  %1767 = vmatpush1.bf16.msra.mxu1 %v1969_v10 }
  0xeb   : > { %475 = vmatprep.subr.bf16.mxu0 %v1970_v11  ;;  %1760 = vmatprep.subr.bf16.mxu1 %v1970_v11 }
  0xee   : > { %476 = vmatpush1.bf16.msra.mxu0 %v1972_v12  ;;  %1768 = vmatpush1.bf16.msra.mxu1 %v1972_v12 }
  0xef   : > { %477 = vmatprep.subr.bf16.mxu0 %v1973_v13  ;;  %1761 = vmatprep.subr.bf16.mxu1 %v1973_v13 }
  0xf2   : > { %478 = vmatpush1.bf16.msra.mxu0 %v1975_v14  ;;  %1769 = vmatpush1.bf16.msra.mxu1 %v1975_v14 }
  0xf3   : > { %479 = vmatprep.subr.bf16.mxu0 %v1976_v15  ;;  %1762 = vmatprep.subr.bf16.mxu1 %v1976_v15 }
  0xf6   : > { %480 = vmatpush1.bf16.msra.mxu0 %v1978_v16  ;;  %1770 = vmatpush1.bf16.msra.mxu1 %v1978_v16 }
  0xf9   : > { %498 = vmatmul.mubr.bf16.vlgmr.msra.gmra.mrb[0].mxu0 %v367_v21  ;;  %508 = vmatmul.mubr.bf16.vlgmr.msra.gmra.mrb[0].mxu1 %v368_v22 }
 0x1cc   : > { %v499_v23 = vpop.f32.mrb[0].mxu0  ;;  %v509_v24 = vpop.f32.mrb[0].mxu1 }
 0x1cd   : > { %518 = vst [vmem:[#allocation2] sm:$0xff] %v499_v23  ;;  %522 = vst [vmem:[#allocation2 + $0x20] sm:$0xff] %v509_v24  ;;  %v501_v25 = vpop.f32.mrb[1].mxu0  ;;  %v511_v26 = vpop.f32.mrb[1].mxu1 }
 0x1ce   : > { %519 = vst [vmem:[#allocation2 + $0x8] sm:$0xff] %v501_v25  ;;  %523 = vst [vmem:[#allocation2 + $0x28] sm:$0xff] %v511_v26  ;;  %v503_v27 = vpop.f32.mrb[2].mxu0  ;;  %v513_v28 = vpop.f32.mrb[2].mxu1 }
 0x1cf   : > { %520 = vst [vmem:[#allocation2 + $0x10] sm:$0xff] %v503_v27  ;;  %524 = vst [vmem:[#allocation2 + $0x30] sm:$0xff] %v513_v28  ;;  %v505_v29 = vpop.f32.mrb[3].mxu0  ;;  %v515_v30 = vpop.f32.mrb[3].mxu1 }
 0x1d0   : > { %521 = vst [vmem:[#allocation2 + $0x18] sm:$0xff] %v505_v29  ;;  %525 = vst [vmem:[#allocation2 + $0x38] sm:$0xff] %v515_v30 }
 0x1d1 PF: > { %v1979_v31 = vld [vmem:[#allocation12 + $0x4] ss:$8 sps:$4 sm:$0xff]   ;;  %v1981_v32 = vld [vmem:[#allocation12] ss:$8 sps:$4 sm:$0xff]   ;;  %v1982_v33 = vld [vmem:[#allocation12 + $0x14] ss:$8 sps:$4 sm:$0xff]  }
 0x1d2   : > { %769 = vmatprep.subr.bf16.mxu0 %v1979_v31  ;;  %850 = vmatprep.subr.bf16.mxu1 %v1979_v31  ;;  %v1984_v34 = vld [vmem:[#allocation12 + $0x10] ss:$8 sps:$4 sm:$0xff]   ;;  %v1985_v35 = vld [vmem:[#allocation12 + $0x24] ss:$8 sps:$4 sm:$0xff]   ;;  %v1987_v36 = vld [vmem:[#allocation12 + $0x20] ss:$8 sps:$4 sm:$0xff]  }
 0x1d3   : > { %770 = vmatpush1.bf16.msra.mxu0 %v1981_v32  ;;  %851 = vmatpush1.bf16.msra.mxu1 %v1981_v32  ;;  %v1988_v37 = vld [vmem:[#allocation12 + $0x34] ss:$8 sps:$4 sm:$0xff]   ;;  %v1990_v38 = vld [vmem:[#allocation12 + $0x30] ss:$8 sps:$4 sm:$0xff]   ;;  %v1991_v39 = vld [vmem:[#allocation12 + $0x44] ss:$8 sps:$4 sm:$0xff]  }
 0x1d4   : > { %771 = vmatprep.subr.bf16.mxu0 %v1982_v33  ;;  %852 = vmatprep.subr.bf16.mxu1 %v1982_v33  ;;  %v1993_v40 = vld [vmem:[#allocation12 + $0x40] ss:$8 sps:$4 sm:$0xff]   ;;  %v1994_v41 = vld [vmem:[#allocation12 + $0x54] ss:$8 sps:$4 sm:$0xff]   ;;  %v1996_v42 = vld [vmem:[#allocation12 + $0x50] ss:$8 sps:$4 sm:$0xff]  }
 0x1d5   : > { %v1997_v43 = vld [vmem:[#allocation12 + $0x64] ss:$8 sps:$4 sm:$0xff]   ;;  %v2758_v44 = vld [vmem:[#allocation2 + $0x8] sm:$0xff]  ;;  %v2002_v49 = vld [vmem:[#allocation12 + $0x70] ss:$8 sps:$4 sm:$0xff]   ;;  %s1724_s30 = sshll.u32 %s2387_s24, 8 }
 0x1d6   : > { %v1999_v47 = vld [vmem:[#allocation12 + $0x60] ss:$8 sps:$4 sm:$0xff]   ;;  %v2000_v48 = vld [vmem:[#allocation12 + $0x74] ss:$8 sps:$4 sm:$0xff]   ;;  %v2003_v50 = vld [vmem:[#allocation12 + $0x84] ss:$8 sps:$4 sm:$0xff]  }
 0x1d7   : > { %772 = vmatpush1.bf16.msra.mxu0 %v1984_v34  ;;  %853 = vmatpush1.bf16.msra.mxu1 %v1984_v34  ;;  %v2760_v45 = vld [vmem:[#allocation2 + $0x18] sm:$0xff]  ;;  %v2005_v51 = vld [vmem:[#allocation12 + $0x80] ss:$8 sps:$4 sm:$0xff]   ;;  %v2006_v52 = vld [vmem:[#allocation12 + $0x94] ss:$8 sps:$4 sm:$0xff]   ;;  %s2783_s7 = scalar_lea.vmem [#allocation8], %s1724_s30 }
 0x1d8   : > { %773 = vmatprep.subr.bf16.mxu0 %v1985_v35  ;;  %854 = vmatprep.subr.bf16.mxu1 %v1985_v35  ;;  %v606_v46 = vpack.c.bf16 %v2760_v45, %v2758_v44  ;;  %v2008_v53 = vld [vmem:[#allocation12 + $0x90] ss:$8 sps:$4 sm:$0xff]   ;;  %v2009_v54 = vld [vmem:[#allocation12 + $0xa4] ss:$8 sps:$4 sm:$0xff]   ;;  %v2011_v55 = vld [vmem:[#allocation12 + $0xa0] ss:$8 sps:$4 sm:$0xff]  }
 0x1d9   : > { %v2012_v56 = vld [vmem:[#allocation12 + $0xb4] ss:$8 sps:$4 sm:$0xff]   ;;  %v2014_v57 = vld [vmem:[#allocation12 + $0xb0] ss:$8 sps:$4 sm:$0xff]   ;;  %v2015_v58 = vld [vmem:[#allocation12 + $0xc4] ss:$8 sps:$4 sm:$0xff]  }
 0x1da   : > { %801 = vmatprep.mubr.bf16.mxu0 %v606_v46  ;;  %v2017_v59 = vld [vmem:[#allocation12 + $0xc0] ss:$8 sps:$4 sm:$0xff]   ;;  %v2018_v60 = vld [vmem:[#allocation12 + $0xd4] ss:$8 sps:$4 sm:$0xff]   ;;  %v2020_v61 = vld [vmem:[#allocation12 + $0xd0] ss:$8 sps:$4 sm:$0xff]  }
 0x1db   : > { %774 = vmatpush1.bf16.msra.mxu0 %v1987_v36  ;;  %855 = vmatpush1.bf16.msra.mxu1 %v1987_v36  ;;  %v2021_v62 = vld [vmem:[#allocation12 + $0xe4] ss:$8 sps:$4 sm:$0xff]   ;;  %v2023_v63 = vld [vmem:[#allocation12 + $0xe0] ss:$8 sps:$4 sm:$0xff]   ;;  %v2024_v0 = vld [vmem:[#allocation12 + $0xf4] ss:$8 sps:$4 sm:$0xff]  }
 0x1dc   : > { %775 = vmatprep.subr.bf16.mxu0 %v1988_v37  ;;  %856 = vmatprep.subr.bf16.mxu1 %v1988_v37  ;;  %v2026_v1 = vld [vmem:[#allocation12 + $0xf0] ss:$8 sps:$4 sm:$0xff]   ;;  %v2766_v3 = vld [vmem:[#allocation2 + $0x10] sm:$0xff]  ;;  %v2768_v4 = vld [vmem:[#allocation2 + $0x28] sm:$0xff]  ;;  %s1725_s1 = sshll.u32 %s2387_s24, 2  ;;  %p1701_p0 = scmp.ne.s32.totalorder %s2387_s24, 2 }
 0x1dd   : > { %v2764_v2 = vld [vmem:[#allocation2] sm:$0xff]  ;;  %v2770_v5 = vld [vmem:[#allocation2 + $0x38] sm:$0xff]  ;;  %v2778_v9 = vld [vmem:[#allocation2 + $0x30] sm:$0xff]  ;;  %s571_s13 = scalar_lea.vmem [#allocation9], %s1725_s1 }
 0x1de   : > { %v605_v6 = vpack.c.bf16 %v2766_v3, %v2764_v2  ;;  %v608_v7 = vpack.c.bf16 %v2770_v5, %v2768_v4  ;;  %v2776_v8 = vld [vmem:[#allocation2 + $0x20] sm:$0xff] }
 0x1df   : > { %776 = vmatpush1.bf16.msra.mxu0 %v1990_v38  ;;  %857 = vmatpush1.bf16.msra.mxu1 %v1990_v38  ;;  %v607_v10 = vpack.c.bf16 %v2778_v9, %v2776_v8  ;;  %v2027_v11 = vld [vmem:[%s2783_s7] ss:$8 sps:$4 sm:$0xff]   ;;  %v2029_v12 = vld [vmem:[%s2783_s7 + $0x4] ss:$8 sps:$4 sm:$0xff]  }
 0x1e0   : > { %777 = vmatprep.subr.bf16.mxu0 %v1991_v39  ;;  %858 = vmatprep.subr.bf16.mxu1 %v1991_v39 }
 0x1e3   : > { %778 = vmatpush1.bf16.msra.mxu0 %v1993_v40  ;;  %859 = vmatpush1.bf16.msra.mxu1 %v1993_v40 }
 0x1e4   : > { %779 = vmatprep.subr.bf16.mxu0 %v1994_v41  ;;  %860 = vmatprep.subr.bf16.mxu1 %v1994_v41 }
 0x1e7   : > { %780 = vmatpush1.bf16.msra.mxu0 %v1996_v42  ;;  %861 = vmatpush1.bf16.msra.mxu1 %v1996_v42 }
 0x1e8   : > { %781 = vmatprep.subr.bf16.mxu0 %v1997_v43  ;;  %862 = vmatprep.subr.bf16.mxu1 %v1997_v43 }
 0x1eb   : > { %782 = vmatpush1.bf16.msra.mxu0 %v1999_v47  ;;  %863 = vmatpush1.bf16.msra.mxu1 %v1999_v47 }
 0x1ec   : > { %783 = vmatprep.subr.bf16.mxu0 %v2000_v48  ;;  %864 = vmatprep.subr.bf16.mxu1 %v2000_v48 }
 0x1ef   : > { %784 = vmatpush1.bf16.msra.mxu0 %v2002_v49  ;;  %865 = vmatpush1.bf16.msra.mxu1 %v2002_v49 }
 0x1f0   : > { %785 = vmatprep.subr.bf16.mxu0 %v2003_v50  ;;  %866 = vmatprep.subr.bf16.mxu1 %v2003_v50 }
 0x1f3   : > { %786 = vmatpush1.bf16.msra.mxu0 %v2005_v51  ;;  %867 = vmatpush1.bf16.msra.mxu1 %v2005_v51  ;;  %v2032_v51 = vld [vmem:[%s2783_s7 + $0x14] ss:$8 sps:$4 sm:$0xff]  }
 0x1f4   : > { %787 = vmatprep.subr.bf16.mxu0 %v2006_v52  ;;  %868 = vmatprep.subr.bf16.mxu1 %v2006_v52  ;;  %v2030_v52 = vld [vmem:[%s2783_s7 + $0x10] ss:$8 sps:$4 sm:$0xff]  }
 0x1f7   : > { %788 = vmatpush1.bf16.msra.mxu0 %v2008_v53  ;;  %869 = vmatpush1.bf16.msra.mxu1 %v2008_v53  ;;  %v2035_v53 = vld [vmem:[%s2783_s7 + $0x24] ss:$8 sps:$4 sm:$0xff]  }
 0x1f8   : > { %789 = vmatprep.subr.bf16.mxu0 %v2009_v54  ;;  %870 = vmatprep.subr.bf16.mxu1 %v2009_v54  ;;  %v2033_v54 = vld [vmem:[%s2783_s7 + $0x20] ss:$8 sps:$4 sm:$0xff]  }
 0x1fb   : > { %790 = vmatpush1.bf16.msra.mxu0 %v2011_v55  ;;  %871 = vmatpush1.bf16.msra.mxu1 %v2011_v55  ;;  %v2038_v55 = vld [vmem:[%s2783_s7 + $0x34] ss:$8 sps:$4 sm:$0xff]  }
 0x1fc   : > { %791 = vmatprep.subr.bf16.mxu0 %v2012_v56  ;;  %872 = vmatprep.subr.bf16.mxu1 %v2012_v56  ;;  %v2036_v56 = vld [vmem:[%s2783_s7 + $0x30] ss:$8 sps:$4 sm:$0xff]  }
 0x1ff   : > { %792 = vmatpush1.bf16.msra.mxu0 %v2014_v57  ;;  %873 = vmatpush1.bf16.msra.mxu1 %v2014_v57  ;;  %v2041_v57 = vld [vmem:[%s2783_s7 + $0x44] ss:$8 sps:$4 sm:$0xff]  }
 0x200   : > { %793 = vmatprep.subr.bf16.mxu0 %v2015_v58  ;;  %874 = vmatprep.subr.bf16.mxu1 %v2015_v58  ;;  %v2039_v58 = vld [vmem:[%s2783_s7 + $0x40] ss:$8 sps:$4 sm:$0xff]  }
 0x203   : > { %794 = vmatpush1.bf16.msra.mxu0 %v2017_v59  ;;  %875 = vmatpush1.bf16.msra.mxu1 %v2017_v59  ;;  %v2044_v59 = vld [vmem:[%s2783_s7 + $0x54] ss:$8 sps:$4 sm:$0xff]  }
 0x204   : > { %795 = vmatprep.subr.bf16.mxu0 %v2018_v60  ;;  %876 = vmatprep.subr.bf16.mxu1 %v2018_v60  ;;  %v2042_v60 = vld [vmem:[%s2783_s7 + $0x50] ss:$8 sps:$4 sm:$0xff]  }
 0x207   : > { %796 = vmatpush1.bf16.msra.mxu0 %v2020_v61  ;;  %877 = vmatpush1.bf16.msra.mxu1 %v2020_v61  ;;  %v2047_v61 = vld [vmem:[%s2783_s7 + $0x64] ss:$8 sps:$4 sm:$0xff]  }
 0x208   : > { %797 = vmatprep.subr.bf16.mxu0 %v2021_v62  ;;  %878 = vmatprep.subr.bf16.mxu1 %v2021_v62  ;;  %v2045_v62 = vld [vmem:[%s2783_s7 + $0x60] ss:$8 sps:$4 sm:$0xff]  }
 0x20b   : > { %798 = vmatpush1.bf16.msra.mxu0 %v2023_v63  ;;  %879 = vmatpush1.bf16.msra.mxu1 %v2023_v63  ;;  %v2050_v63 = vld [vmem:[%s2783_s7 + $0x74] ss:$8 sps:$4 sm:$0xff]  }
 0x20c   : > { %799 = vmatprep.subr.bf16.mxu0 %v2024_v0  ;;  %880 = vmatprep.subr.bf16.mxu1 %v2024_v0  ;;  %v2048_v0 = vld [vmem:[%s2783_s7 + $0x70] ss:$8 sps:$4 sm:$0xff]  }
 0x20f   : > { %800 = vmatpush1.bf16.msra.mxu0 %v2026_v1  ;;  %881 = vmatpush1.bf16.msra.mxu1 %v2026_v1  ;;  %v2053_v1 = vld [vmem:[%s2783_s7 + $0x84] ss:$8 sps:$4 sm:$0xff]  }
 0x210   : > { %1184 = vmatprep.subr.bf16.mxu0 %v2029_v12  ;;  %1771 = vmatprep.subr.bf16.mxu1 %v2029_v12  ;;  %v2057_v12 = vld [vmem:[%s2783_s7 + $0xa0] ss:$8 sps:$4 sm:$0xff]  }
 0x212   : > { %802 = vmatmul.mubr.bf16.vlgmr.msra.gmra.mrb[0].mxu0 %v605_v6  ;;  %v2051_v6 = vld [vmem:[%s2783_s7 + $0x80] ss:$8 sps:$4 sm:$0xff]  }
 0x213   : > { %811 = vmatprep.mubr.bf16.mxu0 %v608_v7  ;;  %1185 = vmatpush1.bf16.msra.mxu0 %v2027_v11  ;;  %v2056_v7 = vld [vmem:[%s2783_s7 + $0x94] ss:$8 sps:$4 sm:$0xff]  }
 0x214   : > { %1186 = vmatprep.subr.bf16.mxu0 %v2032_v51 }
 0x217   : > { %1187 = vmatpush1.bf16.msra.mxu0 %v2030_v52 }
 0x218   : > { %1188 = vmatprep.subr.bf16.mxu0 %v2035_v53 }
 0x21a   : > { %812 = vmatmul.mubr.bf16.gmra.mrb[4].mxu0 %v607_v10  ;;  %v2054_v10 = vld [vmem:[%s2783_s7 + $0x90] ss:$8 sps:$4 sm:$0xff]  }
 0x21b   : > { %1189 = vmatpush1.bf16.msra.mxu0 %v2033_v54 }
 0x21c   : > { %1190 = vmatprep.subr.bf16.mxu0 %v2038_v55 }
 0x21f   : > { %1191 = vmatpush1.bf16.msra.mxu0 %v2036_v56 }
 0x220   : > { %1192 = vmatprep.subr.bf16.mxu0 %v2041_v57 }
 0x223   : > { %1193 = vmatpush1.bf16.msra.mxu0 %v2039_v58 }
 0x224   : > { %1194 = vmatprep.subr.bf16.mxu0 %v2044_v59 }
 0x227   : > { %1195 = vmatpush1.bf16.msra.mxu0 %v2042_v60 }
 0x228   : > { %1196 = vmatprep.subr.bf16.mxu0 %v2047_v61 }
 0x22b   : > { %1197 = vmatpush1.bf16.msra.mxu0 %v2045_v62 }
 0x22c   : > { %1198 = vmatprep.subr.bf16.mxu0 %v2050_v63 }
 0x22f   : > { %1199 = vmatpush1.bf16.msra.mxu0 %v2048_v0 }
 0x230   : > { %1200 = vmatprep.subr.bf16.mxu0 %v2053_v1 }
 0x233   : > { %1201 = vmatpush1.bf16.msra.mxu0 %v2051_v6 }
 0x234   : > { %1202 = vmatprep.subr.bf16.mxu0 %v2056_v7 }
 0x237   : > { %1203 = vmatpush1.bf16.msra.mxu0 %v2054_v10 }
 0x2e5   : > { %v803_v13 = vpop.f32.mrb[0].mxu0 }
 0x2e6   : > { %v822_v14 = vmul.f32 0.03125, %v803_v13  ;;  %v805_v15 = vpop.f32.mrb[1].mxu0  ;;  %v2062_v13 = vld [vmem:[%s2783_s7 + $0xb4] ss:$8 sps:$4 sm:$0xff]  }
 0x2e7   : > { %v823_v16 = vmul.f32 0.03125, %v805_v15  ;;  %v807_v17 = vpop.f32.mrb[2].mxu0  ;;  %v2065_v15 = vld [vmem:[%s2783_s7 + $0xc4] ss:$8 sps:$4 sm:$0xff]  }
 0x2e8   : > { %v824_v18 = vmul.f32 0.03125, %v807_v17  ;;  %v809_v19 = vpop.f32.mrb[3].mxu0  ;;  %v2791_v22 = vsub.f32 %v2764_v2, %v822_v14  ;;  %v2060_v14 = vld [vmem:[%s2783_s7 + $0xb0] ss:$8 sps:$4 sm:$0xff]   ;;  %v2068_v17 = vld [vmem:[%s2783_s7 + $0xd4] ss:$8 sps:$4 sm:$0xff]  }
 0x2e9   : > { %v2788_v20 = vsub.f32 %v2758_v44, %v823_v16  ;;  %v825_v21 = vmul.f32 0.03125, %v809_v19  ;;  %v2063_v16 = vld [vmem:[%s2783_s7 + $0xc0] ss:$8 sps:$4 sm:$0xff]   ;;  %v2071_v19 = vld [vmem:[%s2783_s7 + $0xe4] ss:$8 sps:$4 sm:$0xff]  }
 0x2ea   : > { %v2794_v23 = vsub.f32 %v2766_v3, %v824_v18  ;;  %v838_v29 = vmul.f32 %v2791_v22, %v2791_v22  ;;  %v2066_v18 = vld [vmem:[%s2783_s7 + $0xd0] ss:$8 sps:$4 sm:$0xff]  }
 0x2eb   : > { %v2797_v24 = vsub.f32 %v2760_v45, %v825_v21  ;;  %v839_v27 = vmul.f32 %v2788_v20, %v2788_v20  ;;  %v2069_v21 = vld [vmem:[%s2783_s7 + $0xe0] ss:$8 sps:$4 sm:$0xff]  }
 0x2ec   : > { %v840_v25 = vmul.f32 %v2794_v23, %v2794_v23 }
 0x2ed   : > { %v813_v26 = vpop.f32.mrb[4].mxu0  ;;  %v841_v28 = vmul.f32 %v2797_v24, %v2797_v24 }
 0x2ee   : > { %v826_v30 = vmul.f32 0.03125, %v813_v26  ;;  %v815_v31 = vpop.f32.mrb[5].mxu0  ;;  %v846_v37 = vpack.c.bf16 %v840_v25, %v838_v29  ;;  %v2074_v25 = vld [vmem:[%s2783_s7 + $0xf4] ss:$8 sps:$4 sm:$0xff]   ;;  %v2072_v26 = vld [vmem:[%s2783_s7 + $0xf0] ss:$8 sps:$4 sm:$0xff]  }
 0x2ef   : > { %v827_v32 = vmul.f32 0.03125, %v815_v31  ;;  %v817_v33 = vpop.f32.mrb[6].mxu0  ;;  %v847_v34 = vpack.c.bf16 %v841_v28, %v839_v27  ;;  %v936_v27 = vlaneseq }
 0x2f0   : > { %v828_v35 = vmul.f32 0.03125, %v817_v33  ;;  %v819_v36 = vpop.f32.mrb[7].mxu0  ;;  %v2811_v40 = vsub.f32 %v2776_v8, %v826_v30 }
 0x2f1   : > { %v2808_v38 = vsub.f32 %v2768_v4, %v827_v32  ;;  %v829_v39 = vmul.f32 0.03125, %v819_v36  ;;  %882 = vmatprep.mubr.bf16.mxu1 %v847_v34  ;;  %v937_v31 = vshrl.u32 %v936_v27, 7 }
 0x2f2   : > { %v2814_v41 = vsub.f32 %v2778_v9, %v828_v35  ;;  %883 = vmatmul.mubr.bf16.vlgmr.msra.gmra.mrb[0].mxu1 %v846_v37  ;;  %v842_v48 = vmul.f32 %v2811_v40, %v2811_v40 }
 0x2f3   : > { %v2817_v42 = vsub.f32 %v2770_v5, %v829_v39  ;;  %1787 = vmatpush1.bf16.msra.mxu1 %v2027_v11  ;;  %v843_v46 = vmul.f32 %v2808_v38, %v2808_v38  ;;  %v2059_v11 = vld [vmem:[%s2783_s7 + $0xa4] ss:$8 sps:$4 sm:$0xff]  }
 0x2f4   : > { %v844_v43 = vmul.f32 %v2814_v41, %v2814_v41  ;;  %1772 = vmatprep.subr.bf16.mxu1 %v2032_v51  ;;  %1204 = vmatprep.subr.bf16.mxu0 %v2059_v11 }
 0x2f5   : > { %v845_v47 = vmul.f32 %v2817_v42, %v2817_v42  ;;  %1205 = vmatpush1.bf16.msra.mxu0 %v2057_v12 }
 0x2f6   : > { %v848_v50 = vpack.c.bf16 %v844_v43, %v842_v48  ;;  %1206 = vmatprep.subr.bf16.mxu0 %v2062_v13  ;;  %v572_v48 = vld [vmem:[%s571_s13] sm:$0xf] }
 0x2f7   : > { %v849_v49 = vpack.c.bf16 %v845_v47, %v843_v46  ;;  %1788 = vmatpush1.bf16.msra.mxu1 %v2030_v52  ;;  %v938_v46 = vsub.s32 0, %v937_v31 }
 0x2f8   : > { %1773 = vmatprep.subr.bf16.mxu1 %v2035_v53 }
 0x2f9   : > { %892 = vmatprep.mubr.bf16.mxu1 %v849_v49  ;;  %1207 = vmatpush1.bf16.msra.mxu0 %v2060_v14  ;;  %v942_v49 = vsub.s32 2, %v937_v31  ;;  %v939_v53 = vrot.slane %v572_v48, %v938_v46 }
 0x2fa   : > { %893 = vmatmul.mubr.bf16.gmra.mrb[4].mxu1 %v848_v50  ;;  %1208 = vmatprep.subr.bf16.mxu0 %v2065_v15 }
 0x2fb   : > { %1789 = vmatpush1.bf16.msra.mxu1 %v2033_v54 }
 0x2fc   : > { %1774 = vmatprep.subr.bf16.mxu1 %v2038_v55 }
 0x2fd   : > { %1209 = vmatpush1.bf16.msra.mxu0 %v2063_v16 }
 0x2fe   : > { %1210 = vmatprep.subr.bf16.mxu0 %v2068_v17 }
 0x2ff   : > { %1790 = vmatpush1.bf16.msra.mxu1 %v2036_v56  ;;  %v964_v56 = vsub.s32 1, %v937_v31 }
 0x300   : > { %1775 = vmatprep.subr.bf16.mxu1 %v2041_v57 }
 0x301   : > { %1211 = vmatpush1.bf16.msra.mxu0 %v2066_v18 }
 0x302   : > { %1212 = vmatprep.subr.bf16.mxu0 %v2071_v19 }
 0x303   : > { %1791 = vmatpush1.bf16.msra.mxu1 %v2039_v58 }
 0x304   : > { %1776 = vmatprep.subr.bf16.mxu1 %v2044_v59 }
 0x305   : > { %1213 = vmatpush1.bf16.msra.mxu0 %v2069_v21 }
 0x306   : > { %1214 = vmatprep.subr.bf16.mxu0 %v2074_v25 }
 0x307   : > { %1792 = vmatpush1.bf16.msra.mxu1 %v2042_v60  ;;  %v943_v60 = vrot.slane %v572_v48, %v942_v49 }
 0x308   : > { %1777 = vmatprep.subr.bf16.mxu1 %v2047_v61  ;;  %v968_v61 = vsub.s32 3, %v937_v31 }
 0x309   : > { %1215 = vmatpush1.bf16.msra.mxu0 %v2072_v26 }
 0x30b   : > { %1793 = vmatpush1.bf16.msra.mxu1 %v2045_v62 }
 0x30c   : > { %1778 = vmatprep.subr.bf16.mxu1 %v2050_v63 }
 0x30f   : > { %1794 = vmatpush1.bf16.msra.mxu1 %v2048_v0 }
 0x310   : > { %1779 = vmatprep.subr.bf16.mxu1 %v2053_v1  ;;  %v949_v1 = vrot.slane %v939_v53, %v938_v46 }
 0x313   : > { %1795 = vmatpush1.bf16.msra.mxu1 %v2051_v6 }
 0x314   : > { %1780 = vmatprep.subr.bf16.mxu1 %v2056_v7  ;;  %v965_v7 = vrot.slane %v572_v48, %v964_v56 }
 0x317   : > { %1796 = vmatpush1.bf16.msra.mxu1 %v2054_v10 }
 0x318   : > { %1781 = vmatprep.subr.bf16.mxu1 %v2059_v11  ;;  %v953_v11 = vrot.slane %v943_v60, %v938_v46 }
 0x31b   : > { %1797 = vmatpush1.bf16.msra.mxu1 %v2057_v12  ;;  %v969_v12 = vrot.slane %v572_v48, %v968_v61 }
 0x31c   : > { %1782 = vmatprep.subr.bf16.mxu1 %v2062_v13 }
 0x31d   : > { %v979_v27 = vrot.slane %v969_v12, %v964_v56 }
 0x31f   : > { %1798 = vmatpush1.bf16.msra.mxu1 %v2060_v14 }
 0x320   : > { %1783 = vmatprep.subr.bf16.mxu1 %v2065_v15 }
 0x323   : > { %1799 = vmatpush1.bf16.msra.mxu1 %v2063_v16 }
 0x324   : > { %1784 = vmatprep.subr.bf16.mxu1 %v2068_v17 }
 0x327   : > { %1800 = vmatpush1.bf16.msra.mxu1 %v2066_v18 }
 0x328   : > { %1785 = vmatprep.subr.bf16.mxu1 %v2071_v19 }
 0x32b   : > { %1801 = vmatpush1.bf16.msra.mxu1 %v2069_v21  ;;  %v975_v21 = vrot.slane %v965_v7, %v964_v56 }
 0x32c   : > { %1786 = vmatprep.subr.bf16.mxu1 %v2074_v25 }
 0x32f   : > { %1802 = vmatpush1.bf16.msra.mxu1 %v2072_v26 }
 0x3c5   : > { %v884_v28 = vpop.f32.mrb[0].mxu1 }
 0x3c6   : > { %v903_v29 = vmul.f32 0.03125, %v884_v28  ;;  %v886_v30 = vpop.f32.mrb[1].mxu1 }
 0x3c7   : > { %v904_v32 = vmul.f32 0.03125, %v886_v30  ;;  %v888_v33 = vpop.f32.mrb[2].mxu1 }
 0x3c8   : > { %v911_v34 = vadd.f32 1e-05, %v903_v29  ;;  %v905_v35 = vmul.f32 0.03125, %v888_v33  ;;  %v890_v36 = vpop.f32.mrb[3].mxu1 }
 0x3c9   : > { %v912_v37 = vadd.f32 1e-05, %v904_v32  ;;  %v906_v39 = vmul.f32 0.03125, %v890_v36 }
 0x3ca   : > { %2075 = vrsqrt.f32 %v911_v34  ;;  %v913_v43 = vadd.f32 1e-05, %v905_v35 }
 0x3cb   : > { %2077 = vrsqrt.f32 %v912_v37  ;;  %v914_v47 = vadd.f32 1e-05, %v906_v39 }
 0x3cc   : > { %2079 = vrsqrt.f32 %v913_v43 }
 0x3cd   : > { %2081 = vrsqrt.f32 %v914_v47  ;;  %v894_v50 = vpop.f32.mrb[4].mxu1 }
 0x3ce   : > { %v907_v51 = vmul.f32 0.03125, %v894_v50  ;;  %v896_v52 = vpop.f32.mrb[5].mxu1 }
 0x3cf   : > { %v908_v54 = vmul.f32 0.03125, %v896_v52  ;;  %v898_v55 = vpop.f32.mrb[6].mxu1 }
 0x3d0   : > { %v915_v57 = vadd.f32 1e-05, %v907_v51  ;;  %v909_v58 = vmul.f32 0.03125, %v898_v55  ;;  %v900_v59 = vpop.f32.mrb[7].mxu1 }
 0x3d1   : > { %v916_v62 = vadd.f32 1e-05, %v908_v54  ;;  %v910_v63 = vmul.f32 0.03125, %v900_v59 }
 0x3d2   : > { %2083 = vrsqrt.f32 %v915_v57  ;;  %v917_v0 = vadd.f32 1e-05, %v909_v58 }
 0x3d3   : > { %2085 = vrsqrt.f32 %v916_v62  ;;  %v918_v6 = vadd.f32 1e-05, %v910_v63 }
 0x3d4   : > { %v2076_v10 = vpop.eup %2075  ;;  %2087 = vrsqrt.f32 %v917_v0 }
 0x3d5   : > { %v2078_v13 = vpop.eup %2077  ;;  %v927_v14 = vmul.f32 %v2076_v10, %v2791_v22  ;;  %2089 = vrsqrt.f32 %v918_v6 }
 0x3d6   : > { %v2080_v15 = vpop.eup %2079  ;;  %v928_v16 = vmul.f32 %v2078_v13, %v2788_v20 }
 0x3d7   : > { %v2082_v17 = vpop.eup %2081  ;;  %v954_v18 = vmul.f32 %v949_v1, %v927_v14  ;;  %v929_v19 = vmul.f32 %v2080_v15, %v2794_v23 }
 0x3d8   : > { %v930_v25 = vmul.f32 %v2082_v17, %v2797_v24  ;;  %v955_v26 = vmul.f32 %v953_v11, %v928_v16 }
 0x3d9   : > { %v956_v28 = vmul.f32 %v949_v1, %v929_v19  ;;  %v980_v30 = vadd.f32 %v975_v21, %v954_v18 }
 0x3da   : > { %v957_v29 = vmul.f32 %v953_v11, %v930_v25  ;;  %v981_v33 = vadd.f32 %v979_v27, %v955_v26 }
 0x3db   : > { %v982_v31 = vadd.f32 %v975_v21, %v956_v28 }
 0x3dc   : > { %v2084_v32 = vpop.eup %2083  ;;  %v983_v22 = vadd.f32 %v979_v27, %v957_v29 }
 0x3dd   : > { %v2086_v34 = vpop.eup %2085  ;;  %v931_v35 = vmul.f32 %v2084_v32, %v2811_v40  ;;  %v988_v20 = vpack.c.bf16 %v982_v31, %v980_v30 }
 0x3de   : > { %v2088_v36 = vpop.eup %2087  ;;  %v989_v37 = vpack.c.bf16 %v983_v22, %v981_v33  ;;  %v932_v23 = vmul.f32 %v2086_v34, %v2808_v38  ;;  %v2108_v22 = vld [vmem:[#allocation11] sm:$0xff] (!%p1701_p0)  }
 0x3df   : > { %v2090_v39 = vpop.eup %2089  ;;  %v958_v43 = vmul.f32 %v949_v1, %v931_v35  ;;  %v933_v24 = vmul.f32 %v2088_v36, %v2814_v41  ;;  %v1665_v46 = vmul.bf16 3216621497, %v988_v20  ;;  %v2109_v35 = vld [vmem:[#allocation11 + $0x48] sm:$0xff] (!%p1701_p0)   ;;  %v2113_v36 = vld [vmem:[#allocation11 + $0x58] sm:$0xff] (!%p1701_p0)  }
 0x3e0   : > { %v1666_v47 = vmul.bf16 3216621497, %v989_v37  ;;  %v934_v48 = vmul.f32 %v2090_v39, %v2817_v42  ;;  %v959_v49 = vmul.f32 %v953_v11, %v932_v23  ;;  %v2115_v23 = vld [vmem:[#allocation11 + $0x60] sm:$0xff] (!%p1701_p0)  }
 0x3e1   : > { %v960_v50 = vmul.f32 %v949_v1, %v933_v24  ;;  %2091 = vpow.bf16 %v1665_v46  ;;  %v984_v52 = vadd.f32 %v975_v21, %v958_v43  ;;  %v2116_v39 = vld [vmem:[#allocation11 + $0x20] sm:$0xff] (!%p1701_p0)   ;;  %v2117_v43 = vld [vmem:[#allocation11 + $0x68] sm:$0xff] (!%p1701_p0)   ;;  %v2119_v46 = vld [vmem:[#allocation11 + $0x70] sm:$0xff] (!%p1701_p0)  }
 0x3e2   : > { %2093 = vpow.bf16 %v1666_v47  ;;  %v961_v51 = vmul.f32 %v953_v11, %v934_v48  ;;  %v985_v53 = vadd.f32 %v979_v27, %v959_v49  ;;  %v2118_v24 = vld [vmem:[#allocation11 + $0x28] sm:$0xff] (!%p1701_p0)   ;;  %v2120_v47 = vld [vmem:[#allocation11 + $0x30] sm:$0xff] (!%p1701_p0)   ;;  %v2121_v48 = vld [vmem:[#allocation11 + $0x78] sm:$0xff] (!%p1701_p0)  }
 0x3e3   : > { %v986_v40 = vadd.f32 %v975_v21, %v960_v50  ;;  %v2122_v49 = vld [vmem:[#allocation11 + $0x38] sm:$0xff] (!%p1701_p0)  }
 0x3e4   : > { %v987_v54 = vadd.f32 %v979_v27, %v961_v51 }
 0x3e5   : > { %v990_v55 = vpack.c.bf16 %v986_v40, %v984_v52 }
 0x3e6   : > { %v991_v56 = vpack.c.bf16 %v987_v54, %v985_v53 }
 0x3e7   : > { %v1667_v38 = vmul.bf16 3216621497, %v990_v55 }
 0x3e8   : > { %v1668_v57 = vmul.bf16 3216621497, %v991_v56 }
 0x3e9   : > { %2095 = vpow.bf16 %v1667_v38 }
 0x3ea   : > { %2097 = vpow.bf16 %v1668_v57 }
 0x3ec   : > { %v2092_v41 = vpop.eup %2091 }
 0x3ed   : > { %v2094_v58 = vpop.eup %2093  ;;  %v1008_v59 = vadd.bf16 1065369472, %v2092_v41 }
 0x3ee   : > { %v1009_v60 = vadd.bf16 1065369472, %v2094_v58 }
 0x3ef   : > { %2099 = vrcp.bf16 %v1008_v59 }
 0x3f0   : > { %2101 = vrcp.bf16 %v1009_v60 }
 0x3f4   : > { %v2096_v42 = vpop.eup %2095 }
 0x3f5   : > { %v2098_v61 = vpop.eup %2097  ;;  %v1010_v62 = vadd.bf16 1065369472, %v2096_v42 }
 0x3f6   : > { %v1011_v63 = vadd.bf16 1065369472, %v2098_v61 }
 0x3f7   : > { %2103 = vrcp.bf16 %v1010_v62 }
 0x3f8   : > { %2105 = vrcp.bf16 %v1011_v63 }
 0x3fa   : > { %v2100_v0 = vpop.eup %2099 }
 0x3fb   : > { %v2102_v1 = vpop.eup %2101  ;;  %v1013_v6 = vmul.bf16 1065369472, %v2100_v0 }
 0x3fc   : > { %v1015_v7 = vmul.bf16 1065369472, %v2102_v1 }
 0x3fd   : > { %v1020_v11 = vmul.bf16 %v1013_v6, %v988_v20  ;;  %v2111_v20 = vld [vmem:[#allocation11 + $0x50] sm:$0xff] (!%p1701_p0)  }
 0x3fe   : > { %v1021_v10 = vmul.bf16 %v1015_v7, %v989_v37  ;;  %v2114_v37 = vld [vmem:[#allocation11 + $0x18] sm:$0xff] (!%p1701_p0)  }
 0x400   : > { %1216 = vmatprep.mubr.bf16.mxu0 %v1021_v10 }
 0x401   : > { %1217 = vmatmul.mubr.bf16.vlgmr.msra.gmra.mrb[8].mxu0 %v1020_v11 }
 0x402   : > { %v2104_v12 = vpop.eup %2103 }
 0x403   : > { %v2106_v13 = vpop.eup %2105  ;;  %v1017_v14 = vmul.bf16 1065369472, %v2104_v12 }
 0x404   : > { %v1019_v15 = vmul.bf16 1065369472, %v2106_v13 }
 0x405   : > { %v1022_v17 = vmul.bf16 %v1017_v14, %v990_v55 }
 0x406   : > { %v1023_v16 = vmul.bf16 %v1019_v15, %v991_v56 }
 0x408   : > { %1226 = vmatprep.mubr.bf16.mxu1 %v1023_v16 }
 0x409   : > { %1227 = vmatmul.mubr.bf16.vlgmr.msra.gmra.mrb[8].mxu1 %v1022_v17 }
 0x4d4   : > { %v1218_v18 = vpop.f32.mrb[8].mxu0 }
 0x4d5   : > { %v2867_v19 = vadd.f32 %v1218_v18, %v2764_v2  ;;  %v1220_v21 = vpop.f32.mrb[9].mxu0 }
 0x4d6   : > { %v1238_v25 = vadd.f32 %v1220_v21, %v2758_v44  ;;  %v1222_v26 = vpop.f32.mrb[10].mxu0 }
 0x4d7   : > { %1245 = vst [vmem:[#allocation2] sm:$0xff] %v2867_v19  ;;  %v2872_v27 = vadd.f32 %v1222_v26, %v2766_v3  ;;  %v1224_v28 = vpop.f32.mrb[11].mxu0 }
 0x4d8   : > { %1246 = vst [vmem:[#allocation2 + $0x8] sm:$0xff] %v1238_v25  ;;  %v1240_v29 = vadd.f32 %v1224_v28, %v2760_v45 }
 0x4d9   : > { %1247 = vst [vmem:[#allocation2 + $0x10] sm:$0xff] %v2872_v27  ;;  %v1257_v50 = vpack.c.bf16 (!%p1701_p0), %v2872_v27, %v2867_v19 }
 0x4da   : > { %1248 = vst [vmem:[#allocation2 + $0x18] sm:$0xff] %v1240_v29  ;;  %v1258_v34 = vpack.c.bf16 (!%p1701_p0), %v1240_v29, %v1238_v25 }
 0x4dc   : > { %v1228_v30 = vpop.f32.mrb[8].mxu1  ;;  %1256 = sbr.rel (%p1701_p0) target bundleno = 1496 (0x5d8), region = 76  ;;  %1421 = vmatprep.mubr.bf16.mxu0 (!%p1701_p0), %v1258_v34 }
 0x4dd   : > { %v2877_v2 = vadd.f32 %v1228_v30, %v2776_v8  ;;  %v1230_v31 = vpop.f32.mrb[9].mxu1  ;;  %v2107_v8 = vld [vmem:[#allocation11 + $0x40] sm:$0xff] (!%p1701_p0)  }
 0x4de   : > { %v1242_v44 = vadd.f32 %v1230_v31, %v2768_v4  ;;  %v1232_v32 = vpop.f32.mrb[10].mxu1  ;;  %1727 = vmatprep.subr.bf16.mxu0 (!%p1701_p0), %v2107_v8  ;;  %1803 = vmatprep.subr.bf16.mxu1 (!%p1701_p0), %v2107_v8 }
 0x4df   : > { %1249 = vst [vmem:[#allocation2 + $0x20] sm:$0xff] %v2877_v2  ;;  %v2882_v3 = vadd.f32 %v1232_v32, %v2778_v9  ;;  %v1234_v33 = vpop.f32.mrb[11].mxu1  ;;  %1728 = vmatpush3.bf16.msra.mxu0 (!%p1701_p0), %v2108_v22  ;;  %1811 = vmatpush3.bf16.msra.mxu1 (!%p1701_p0), %v2108_v22  ;;  %v2110_v9 = vld [vmem:[#allocation11 + $0x8] sm:$0xff] (!%p1701_p0)  }
 0x4e0   : > { %1250 = vst [vmem:[#allocation2 + $0x28] sm:$0xff] %v1242_v44  ;;  %v1244_v45 = vadd.f32 %v1234_v33, %v2770_v5  ;;  %1729 = vmatprep.subr.bf16.mxu0 (!%p1701_p0), %v2109_v35  ;;  %1804 = vmatprep.subr.bf16.mxu1 (!%p1701_p0), %v2109_v35  ;;  %v2112_v5 = vld [vmem:[#allocation11 + $0x10] sm:$0xff] (!%p1701_p0)  }
 0x4e1   : > { %1251 = vst [vmem:[#allocation2 + $0x30] sm:$0xff] %v2882_v3  ;;  %v1259_v51 = vpack.c.bf16 (!%p1701_p0), %v2882_v3, %v2877_v2 }
 0x4e2   : > { %1252 = vst [vmem:[#allocation2 + $0x38] sm:$0xff] %v1244_v45  ;;  %v1260_v4 = vpack.c.bf16 (!%p1701_p0), %v1244_v45, %v1242_v44 }
 0x4e3   : > { %1730 = vmatpush3.bf16.msra.mxu0 %v2110_v9  ;;  %1812 = vmatpush3.bf16.msra.mxu1 %v2110_v9 }
 0x4e4   : > { %1429 = vmatprep.mubr.bf16.mxu1 %v1260_v4  ;;  %1731 = vmatprep.subr.bf16.mxu0 %v2111_v20 }
 0x4e5   : > { %1805 = vmatprep.subr.bf16.mxu1 %v2111_v20 }
 0x4e7   : > { %1732 = vmatpush3.bf16.msra.mxu0 %v2112_v5  ;;  %1813 = vmatpush3.bf16.msra.mxu1 %v2112_v5 }
 0x4e8   : > { %1733 = vmatprep.subr.bf16.mxu0 %v2113_v36  ;;  %1806 = vmatprep.subr.bf16.mxu1 %v2113_v36 }
 0x4eb   : > { %1734 = vmatpush3.bf16.msra.mxu0 %v2114_v37  ;;  %1814 = vmatpush3.bf16.msra.mxu1 %v2114_v37 }
 0x4ec   : > { %1735 = vmatprep.subr.bf16.mxu0 %v2115_v23  ;;  %1807 = vmatprep.subr.bf16.mxu1 %v2115_v23 }
 0x4ef   : > { %1736 = vmatpush3.bf16.msra.mxu0 %v2116_v39  ;;  %1815 = vmatpush3.bf16.msra.mxu1 %v2116_v39 }
 0x4f0   : > { %1737 = vmatprep.subr.bf16.mxu0 %v2117_v43  ;;  %1808 = vmatprep.subr.bf16.mxu1 %v2117_v43 }
 0x4f3   : > { %1738 = vmatpush3.bf16.msra.mxu0 %v2118_v24  ;;  %1816 = vmatpush3.bf16.msra.mxu1 %v2118_v24 }
 0x4f4   : > { %1739 = vmatprep.subr.bf16.mxu0 %v2119_v46  ;;  %1809 = vmatprep.subr.bf16.mxu1 %v2119_v46 }
 0x4f7   : > { %1740 = vmatpush3.bf16.msra.mxu0 %v2120_v47  ;;  %1817 = vmatpush3.bf16.msra.mxu1 %v2120_v47 }
 0x4f8   : > { %1741 = vmatprep.subr.bf16.mxu0 %v2121_v48  ;;  %1810 = vmatprep.subr.bf16.mxu1 %v2121_v48 }
 0x4fb   : > { %1742 = vmatpush3.bf16.msra.mxu0 %v2122_v49  ;;  %1818 = vmatpush3.bf16.msra.mxu1 %v2122_v49 }
 0x4fe   : > { %1422 = vmatmul.mubr.bf16.vlgmr.msra.gmra.mrb[0].mxu0 %v1257_v50  ;;  %1430 = vmatmul.mubr.bf16.vlgmr.msra.gmra.mrb[0].mxu1 %v1259_v51 }
 0x5d1   : > { %v1743_v52 = vpop.f32.mrb[0].mxu0  ;;  %v1749_v40 = vpop.f32.mrb[0].mxu1 }
 0x5d2   : > { %v1744_v53 = vpop.f32.mrb[1].mxu0  ;;  %v1750_v54 = vpop.f32.mrb[1].mxu1 }
 0x5d3   : > { %v1745_v55 = vadd.f32 %v1744_v53, %v1743_v52  ;;  %v1751_v56 = vadd.f32 %v1750_v54, %v1749_v40  ;;  %v1746_v38 = vpop.f32.mrb[2].mxu0  ;;  %v1752_v57 = vpop.f32.mrb[2].mxu1 }
 0x5d4   : > { %v1747_v41 = vpop.f32.mrb[3].mxu0  ;;  %v1753_v58 = vpop.f32.mrb[3].mxu1 }
 0x5d5   : > { %1438 = vst [vmem:[%s2751_s4] sm:$0xff] %v1745_v55  ;;  %1440 = vst [vmem:[%s2751_s4 + $0x10] sm:$0xff] %v1751_v56  ;;  %v1748_v59 = vadd.f32 %v1747_v41, %v1746_v38  ;;  %v1754_v60 = vadd.f32 %v1753_v58, %v1752_v57 }
 0x5d7   : > { %1439 = vst [vmem:[%s2751_s4 + $0x8] sm:$0xff] %v1748_v59  ;;  %1441 = vst [vmem:[%s2751_s4 + $0x18] sm:$0xff] %v1754_v60 }
 0x5d8 PF: > { %s1726_s24 = sshll.u32 %s2391_s25, 9  ;;  %s2999_s29 = sld [smem:[#allocation24_spill]] }
 0x5d9   : > { %s1456_s15 = sshll.u32 %s2751_s4, 4  ;;  %s1443_s6 = scalar_lea.sflag [#allocation5], %s2729_s2  ;;  %s2902_s15 = int_to_ptr.vmem [resolvable:$true] %s1456_s15 }
 0x5da   : > { %s2293_s3 = scalar_lea.vmem %s2902_s15, 512  ;;  %p3000_p8 = scmp.ne.s32.totalorder %s2994_s8, 0 }
 0x5db   : > { %p2294_p7 = scmp.ne.s32.totalorder %s2902_s15, %s2293_s3  ;;  %s2416_s16 = smov [#allocation14]  }
 0x5dc   : > { %s2297_s11 = sshll.u32 %s2416_s16, 4  ;;  %s2298_s11 = int_to_ptr.vmem [resolvable:$false] %s2297_s11 }
 0x5dd   : > { %p2295_p12 = pnand %p2294_p7, %p3000_p8  ;;  %s2299_s25 = scalar_lea.vmem %s2298_s11, 1024 }
 0x5de   : > { %s2899_s14 = scalar_lea.hbm %s2999_s29, %s1726_s24  ;;  %p2300_p4 = scmp.lt.s32.totalorder %s2902_s15, %s2298_s11 }
 0x5df   : > { %p2296_p2 = pneg %p2295_p12  ;;  %p2301_p1 = scmp.lt.s32.totalorder %s2299_s25, %s2293_s3 }
 0x5e1   : > { %p2302_p5 = por %p2301_p1, %p2300_p4 }
 0x5e3   : > { %p2303_p6 = pnand %p2302_p5, %p2296_p2 }
 0x5e5   : > { %2306 = shalt.err (!%p2303_p6)
}
 0x5e6   : > { %s2307_s12 = scalar_lea.hbm %s2899_s14, 512  ;;  %s2311_s7 = scalar_lea.hbm %s2999_s29, 1024 }
 0x5e7   : > { %p2308_p9 = scmp.ne.s32.totalorder %s2899_s14, %s2307_s12  ;;  %p2312_p13 = scmp.lt.u32.totalorder %s2899_s14, %s2999_s29 }
 0x5e8   : > { %p2313_p11 = scmp.lt.u32.totalorder %s2311_s7, %s2307_s12  ;;  %p2315_p7 = scmp.lt.u32.totalorder %s2307_s12, %s2899_s14 }
 0x5e9   : > { %p2309_p10 = pnand %p2308_p9, %p3000_p8 }
 0x5ea   : > { %p2314_p0 = por %p2313_p11, %p2312_p13 }
 0x5eb   : > { %p2310_p3 = pneg %p2309_p10 }
 0x5ec   : > { %p2316_p12 = por %p2315_p7, %p2314_p0 }
 0x5ee   : > { %p2317_p2 = pnand %p2316_p12, %p2310_p3 }
 0x5f0   : > { %2320 = shalt.err (!%p2317_p2)
}
 0x5f1   : > { %s2417_s24 = smov 128   ;;  %s2418_s19 = smov 8  }
 0x5f2   : > { %1841 = dma.vmem_to_hbm [thread:$0]  (%p3000_p8), %s2902_s15, 512, %s2899_s14, %s1443_s6, %s2417_s24, %s2417_s24, %s2418_s19  }
 0x5f3 PF: > { %p1878_p4 = scmp.ge.s32.totalorder %s2403_s28, 2  ;;  %s1471_s10 = sand.u32 1, %s2375_s21  }
 0x5f4   : > { %p3001_p1 = scmp.ne.s32.totalorder %s2995_s9, 0  ;;  %s1472_s3 = scalar_lea.sflag [#allocation5], %s1471_s10 }
 0x5f6   : > { %p1864_p5 = pnand %p1878_p4, %p3001_p1 }
 0x5f8   : > { %2370 = dma.done.wait (!%p1864_p5), %s1472_s3, 512  }
 0x5f9   : > { %2372 = vsyncadd (!%p1864_p5), %s1472_s3, 4294966784  ;;  %s25_s28 = sadd.s32 1, %s2403_s28   ;;  %s3002_s21 = smov %s2379_s22 }
 0x5fa   : > { %p22_p6 = scmp.ge.s32.totalorder %s25_s28, 8   ;;  %s3003_s22 = smov %s2383_s23 }
 0x5fb   : > { %s3004_s23 = smov %s2679_s17  ;;  %s3005_s24 = smov %s2395_s26 }
 0x5fc   : > { %s3006_s25 = smov %s2399_s27  ;;  %s3007_s26 = smov %s3010_s18 }
 0x5fd   : > { %s3008_s27 = smov %s3014_s20  ;;  %24 = sbr.rel (!%p22_p6) target bundleno = 16 (0x10), region = 119 }
 0x604   :  { %1477 = vsyncpa [#allocation4], 1 }
 0x605   :  { %1479 = vsyncpa [#allocation4 + $0x1], 1 }
 0x606   :  { %1480 = vsyncpa [#allocation7], 1 }
 0x607   :  { %1481 = vsyncpa [#allocation10], 1 }
 0x608   :  { %1482 = vsyncpa [#allocation13], 1 }
 0x609   :  { %1483 = vsyncpa [#allocation5], 1 }
 0x60a   :  { %1485 = vsyncpa [#allocation5 + $0x1], 1 }

</bundles_post_ra>
